<compile_context>
chip_gen: v5e
topology: v5e:2x2
jax: 0.10.0
libtpu: 0.0.40
codegen_flags: <defaults>
</compile_context>

<pallas_src>
from functools import partial

import jax
import jax.numpy as jnp
from jax.experimental import pallas as pl
from jax.experimental.pallas import tpu as pltpu


# --------------------------- fused GRU + FC kernel ----------------------------

def _make_gru_fc_kernel(S, B, H, layers):
    """Fused kernel for `layers` stacked GRU layers + Linear head.

    Positional refs:
      x2d (S*B, Din),
      [w_ih_t (Din_l,3H), w_hh_t (H,3H), b_fold (1,3H), b_hn (1,H)] * layers,
      w_fc_t (H, O_pad), b_fc (1, O_pad),
      o_ref (S*B, O_pad)                      # output (lane-dense, padded)
    """
    def kernel(*refs):
        x_ref = refs[0]
        w_ih = [refs[1 + 4 * l][...] for l in range(layers)]     # (Din_l, 3H)
        w_hh = [refs[2 + 4 * l][...] for l in range(layers)]     # (H, 3H)
        b_fold = [refs[3 + 4 * l][...] for l in range(layers)]   # (1, 3H)
        b_hn = [refs[4 + 4 * l][...] for l in range(layers)]     # (1, H)
        w_fc = refs[1 + 4 * layers][...]                         # (H, O_pad)
        b_fc = refs[2 + 4 * layers][...]                         # (1, O_pad)
        o_ref = refs[3 + 4 * layers]                             # (S*B, O_pad)
        O_pad = b_fc.shape[1]

        # Layer-0 input projection for the whole sequence: one big MXU matmul,
        # with b_ih and the r/z parts of b_hh folded in (off the serial path).
        gih0 = jnp.dot(x_ref[...].astype(jnp.float32), w_ih[0],
                       preferred_element_type=jnp.float32) + b_fold[0]

        # Hoist broadcasts out of the unrolled loops (JAX does not CSE them).
        b_fold_bc = [None] + [jnp.broadcast_to(b_fold[l], (B, 3 * H))
                              for l in range(1, layers)]
        b_hn_bc = [jnp.broadcast_to(b_hn[l], (B, H)) for l in range(layers)]
        b_fc_bc = jnp.broadcast_to(b_fc, (B, O_pad))

        def cell(gi_b, h, l):
            """One GRU cell. gi_b: (B,3H) input projection incl. folded biases."""
            gh = jnp.dot(h, w_hh[l], preferred_element_type=jnp.float32)
            # Single EUP push covers both r and z.
            rz = jax.nn.sigmoid(gi_b[:, :2 * H] + gh[:, :2 * H])
            r = rz[:, :H]
            z = rz[:, H:2 * H]
            # b_hn stays inside the r-gated term (PyTorch GRU semantics).
            n = jnp.tanh(gi_b[:, 2 * H:] + r * (gh[:, 2 * H:] + b_hn_bc[l]))
            return (1.0 - z) * n + z * h

        h = [jnp.zeros((B, H), jnp.float32) for _ in range(layers)]
        for t in range(S):                       # static unroll (S small)
            # ---- layer 0: input projection already precomputed ----
            h[0] = cell(gih0[t * B:(t + 1) * B, :], h[0], 0)
            x_t = h[0]
            # ---- upper layers: per-step cells (wavefront dataflow) ----
            for l in range(1, layers):
                gi = jnp.dot(x_t, w_ih[l],
                             preferred_element_type=jnp.float32) + b_fold_bc[l]
                h[l] = cell(gi, h[l], l)
                x_t = h[l]
            # FC head per step: hangs off the recurrence; lane-dense store,
            # never reloaded.
            o_t = jnp.dot(x_t, w_fc, preferred_element_type=jnp.float32) + b_fc_bc
            o_ref[t * B:(t + 1) * B, :] = o_t.astype(o_ref.dtype)

    return kernel


# --------------------------------- wrappers ------------------------------------

def prepare_params(params):
    """One-time prep (outside the forward path): fold biases, pad FC to 128 lanes."""
    H = params["gru"][0]["w_hh_t"].shape[0]
    O = params["fc"]["w_t"].shape[1]
    O_pad = ((O + 127) // 128) * 128
    layers_prepped = []
    for lp in params["gru"]:
        b_ih, b_hh = lp["b_ih"], lp["b_hh"]
        # Fold b_ih (all gates) + b_hh (r,z gates) into one bias; keep b_hn apart.
        b_fold = jnp.concatenate(
            [b_ih[:, :2 * H] + b_hh[:, :2 * H], b_ih[:, 2 * H:]], axis=1)
        layers_prepped.append({
            "w_ih_t": lp["w_ih_t"],          # (Din_l, 3H), gate order r|z|n
            "w_hh_t": lp["w_hh_t"],          # (H, 3H)
            "b_fold": b_fold,                # (1, 3H)
            "b_hn": b_hh[:, 2 * H:],         # (1, H)
        })
    return {
        "layers": layers_prepped,
        "w_fc": jnp.pad(params["fc"]["w_t"], ((0, 0), (0, O_pad - O))),
        "b_fc": jnp.pad(params["fc"]["b"], ((0, 0), (0, O_pad - O))),
    }


@partial(jax.jit, static_argnames=("out_dim",))
def gru_forward(prepped, sequence, out_dim):
    """sequence: (S, B, input_dim) -> (S, B, output_dim).  Zero initial hidden."""
    # TODO(synk): the PyTorch module carries self.hidden across forward() calls;
    # here every call starts from the zero hidden state (as after init_hidden()).
    S, B, Din = sequence.shape
    layers = len(prepped["layers"])
    H = prepped["layers"][0]["w_hh_t"].shape[0]
    O_pad = prepped["w_fc"].shape[1]

    x2d = sequence.reshape(S * B, Din).astype(jnp.float32)
    inputs = [x2d]
    for lp in prepped["layers"]:
        inputs += [lp["w_ih_t"], lp["w_hh_t"], lp["b_fold"], lp["b_hn"]]
    inputs += [prepped["w_fc"], prepped["b_fc"]]

    flops = (2 * S * B * Din * 3 * H                       # layer-0 input proj
             + layers * S * 2 * B * H * 3 * H              # recurrent matmuls
             + (layers - 1) * S * 2 * B * H * 3 * H        # upper-layer input proj
             + S * 2 * B * H * O_pad)                      # FC head
    transcendentals = layers * S * B * 3 * H
    bytes_accessed = (sum(int(a.size) * a.dtype.itemsize for a in inputs)
                      + S * B * O_pad * 4)

    out_pad = pl.pallas_call(
        _make_gru_fc_kernel(S, B, H, layers),
        out_shape=jax.ShapeDtypeStruct((S * B, O_pad), jnp.float32),
        in_specs=[pl.BlockSpec(memory_space=pltpu.MemorySpace.VMEM)] * len(inputs),
        out_specs=pl.BlockSpec(memory_space=pltpu.MemorySpace.VMEM),
        cost_estimate=pl.CostEstimate(flops=flops,
                                      transcendentals=transcendentals,
                                      bytes_accessed=bytes_accessed),
    )(*inputs)

    return out_pad[:, :out_dim].reshape(S, B, out_dim)


# ------------------------------ params & reference ----------------------------

def init_params(key, input_dim, hidden_dim, output_dim, layers):
    """Mimics PyTorch nn.GRU / nn.Linear default init U(-1/sqrt(H), 1/sqrt(H))."""
    params = {"gru": [], "fc": None}
    bound = 1.0 / float(hidden_dim) ** 0.5
    for l in range(layers):
        d_in = input_dim if l == 0 else hidden_dim
        key, k1, k2, k3, k4 = jax.random.split(key, 5)
        w_ih = jax.random.uniform(k1, (3 * hidden_dim, d_in),
                                  minval=-bound, maxval=bound, dtype=jnp.float32)
        w_hh = jax.random.uniform(k2, (3 * hidden_dim, hidden_dim),
                                  minval=-bound, maxval=bound, dtype=jnp.float32)
        b_ih = jax.random.uniform(k3, (3 * hidden_dim,),
                                  minval=-bound, maxval=bound, dtype=jnp.float32)
        b_hh = jax.random.uniform(k4, (3 * hidden_dim,),
                                  minval=-bound, maxval=bound, dtype=jnp.float32)
        params["gru"].append({
            "w_ih_t": w_ih.T,            # (d_in, 3H) — gate order r|z|n
            "w_hh_t": w_hh.T,            # (H, 3H)
            "b_ih": b_ih[None, :],       # (1, 3H)
            "b_hh": b_hh[None, :],       # (1, 3H) — b_hn must stay separate (r-gated)
        })
    key, k5, k6 = jax.random.split(key, 3)
    fc_bound = 1.0 / float(hidden_dim) ** 0.5
    w_fc = jax.random.uniform(k5, (output_dim, hidden_dim),
                              minval=-fc_bound, maxval=fc_bound, dtype=jnp.float32)
    b_fc = jax.random.uniform(k6, (output_dim,),
                              minval=-fc_bound, maxval=fc_bound, dtype=jnp.float32)
    params["fc"] = {"w_t": w_fc.T, "b": b_fc[None, :]}
    return params


@jax.jit
def gru_reference(params, sequence):
    """Pure-JAX reference (same math, lax.scan) for correctness checking."""
    hp = jax.lax.Precision.HIGHEST
    x = sequence
    for lp in params["gru"]:
        w_ih_t, w_hh_t = lp["w_ih_t"], lp["w_hh_t"]
        b_ih, b_hh = lp["b_ih"], lp["b_hh"]
        H = w_hh_t.shape[0]

        def step(h, x_t, w_ih_t=w_ih_t, w_hh_t=w_hh_t, b_ih=b_ih, b_hh=b_hh, H=H):
            gi = jnp.dot(x_t, w_ih_t, precision=hp) + b_ih
            gh = jnp.dot(h, w_hh_t, precision=hp) + b_hh
            r = jax.nn.sigmoid(gi[:, :H] + gh[:, :H])
            z = jax.nn.sigmoid(gi[:, H:2 * H] + gh[:, H:2 * H])
            n = jnp.tanh(gi[:, 2 * H:] + r * gh[:, 2 * H:])
            h_new = (1.0 - z) * n + z * h
            return h_new, h_new

        h0 = jnp.zeros((sequence.shape[1], H), jnp.float32)
        _, x = jax.lax.scan(step, h0, x)
    return jnp.dot(x, params["fc"]["w_t"], precision=hp) + params["fc"]["b"]


# ----------------------------------- main --------------------------------------

if __name__ == "__main__":
    config = dict(input_dim=16, hidden_dim=32, output_dim=8,
                  batch_size=2, layers=2, cuda=False)
    SEQ = 8

    key = jax.random.PRNGKey(0)
    pkey, xkey = jax.random.split(key)
    params = init_params(pkey, config["input_dim"], config["hidden_dim"],
                         config["output_dim"], config["layers"])
    prepped = prepare_params(params)          # one-time: bias folding + FC padding
    sequence = jax.random.normal(
        xkey, (SEQ, config["batch_size"], config["input_dim"]), dtype=jnp.float32)

    out = gru_forward(prepped, sequence, config["output_dim"])
    out = jax.block_until_ready(out)
    assert out.shape == (SEQ, config["batch_size"], config["output_dim"])
    assert bool(jnp.all(jnp.isfinite(out)))

    ref = jax.block_until_ready(gru_reference(params, sequence))
    assert bool(jnp.allclose(out, ref, atol=2e-3, rtol=2e-3)), \
        ("max abs diff", float(jnp.max(jnp.abs(out - ref))))

    print("KERNEL_OK")
</pallas_src>

<mosaic_0001>
module attributes {stable_mosaic.version = 11 : i64} {
  func.func @kernel(%arg0: memref<16x16xf32, #tpu.memory_space<vmem>>, %arg1: memref<16x96xf32, #tpu.memory_space<vmem>>, %arg2: memref<32x96xf32, #tpu.memory_space<vmem>>, %arg3: memref<1x96xf32, #tpu.memory_space<vmem>>, %arg4: memref<1x32xf32, #tpu.memory_space<vmem>>, %arg5: memref<32x96xf32, #tpu.memory_space<vmem>>, %arg6: memref<32x96xf32, #tpu.memory_space<vmem>>, %arg7: memref<1x96xf32, #tpu.memory_space<vmem>>, %arg8: memref<1x32xf32, #tpu.memory_space<vmem>>, %arg9: memref<32x128xf32, #tpu.memory_space<vmem>>, %arg10: memref<1x128xf32, #tpu.memory_space<vmem>>, %arg11: memref<16x128xf32, #tpu.memory_space<vmem>>) attributes {dimension_semantics = [], scalar_prefetch = 0 : i64, scratch_operands = 0 : i64, tpu.core_type = #tpu.core_type<tc>} {
    %c0 = arith.constant 0 : index
    %c0_0 = arith.constant 0 : index
    %0 = vector.load %arg1[%c0, %c0_0] : memref<16x96xf32, #tpu.memory_space<vmem>>, vector<16x96xf32>
    %c0_1 = arith.constant 0 : index
    %c0_2 = arith.constant 0 : index
    %1 = vector.load %arg5[%c0_1, %c0_2] : memref<32x96xf32, #tpu.memory_space<vmem>>, vector<32x96xf32>
    %c0_3 = arith.constant 0 : index
    %c0_4 = arith.constant 0 : index
    %2 = vector.load %arg2[%c0_3, %c0_4] : memref<32x96xf32, #tpu.memory_space<vmem>>, vector<32x96xf32>
    %c0_5 = arith.constant 0 : index
    %c0_6 = arith.constant 0 : index
    %3 = vector.load %arg6[%c0_5, %c0_6] : memref<32x96xf32, #tpu.memory_space<vmem>>, vector<32x96xf32>
    %c0_7 = arith.constant 0 : index
    %c0_8 = arith.constant 0 : index
    %4 = vector.load %arg3[%c0_7, %c0_8] : memref<1x96xf32, #tpu.memory_space<vmem>>, vector<1x96xf32>
    %c0_9 = arith.constant 0 : index
    %c0_10 = arith.constant 0 : index
    %5 = vector.load %arg7[%c0_9, %c0_10] : memref<1x96xf32, #tpu.memory_space<vmem>>, vector<1x96xf32>
    %c0_11 = arith.constant 0 : index
    %c0_12 = arith.constant 0 : index
    %6 = vector.load %arg4[%c0_11, %c0_12] : memref<1x32xf32, #tpu.memory_space<vmem>>, vector<1x32xf32>
    %c0_13 = arith.constant 0 : index
    %c0_14 = arith.constant 0 : index
    %7 = vector.load %arg8[%c0_13, %c0_14] : memref<1x32xf32, #tpu.memory_space<vmem>>, vector<1x32xf32>
    %c0_15 = arith.constant 0 : index
    %c0_16 = arith.constant 0 : index
    %8 = vector.load %arg9[%c0_15, %c0_16] : memref<32x128xf32, #tpu.memory_space<vmem>>, vector<32x128xf32>
    %c0_17 = arith.constant 0 : index
    %c0_18 = arith.constant 0 : index
    %9 = vector.load %arg10[%c0_17, %c0_18] : memref<1x128xf32, #tpu.memory_space<vmem>>, vector<1x128xf32>
    %c0_19 = arith.constant 0 : index
    %c0_20 = arith.constant 0 : index
    %10 = vector.load %arg0[%c0_19, %c0_20] : memref<16x16xf32, #tpu.memory_space<vmem>>, vector<16x16xf32>
    %cst = arith.constant dense<0.000000e+00> : vector<16x96xf32>
    %11 = tpu.matmul %10, %0, %cst {dimension_numbers = #tpu.dot_dimension_numbers<[1], [0], [0], [1], [0, 0, 1, 1], [], []>} : vector<16x16xf32>, vector<16x96xf32>, vector<16x96xf32> -> vector<16x96xf32>
    %12 = vector.broadcast %4 : vector<1x96xf32> to vector<16x96xf32>
    %13 = arith.addf %11, %12 : vector<16x96xf32>
    %14 = vector.shape_cast %5 : vector<1x96xf32> to vector<1x96xf32>
    %15 = vector.broadcast %14 : vector<1x96xf32> to vector<2x96xf32>
    %16 = vector.shape_cast %6 : vector<1x32xf32> to vector<1x32xf32>
    %17 = vector.broadcast %16 : vector<1x32xf32> to vector<2x32xf32>
    %18 = vector.shape_cast %7 : vector<1x32xf32> to vector<1x32xf32>
    %19 = vector.broadcast %18 : vector<1x32xf32> to vector<2x32xf32>
    %20 = vector.shape_cast %9 : vector<1x128xf32> to vector<1x128xf32>
    %21 = vector.broadcast %20 : vector<1x128xf32> to vector<2x128xf32>
    %cst_21 = arith.constant 0.000000e+00 : f32
    %22 = vector.broadcast %cst_21 : f32 to vector<2x32xf32>
    %cst_22 = arith.constant 0.000000e+00 : f32
    %23 = vector.broadcast %cst_22 : f32 to vector<2x32xf32>
    %24 = vector.extract_strided_slice %13 {offsets = [0, 0], sizes = [2, 96], strides = [1, 1]} : vector<16x96xf32> to vector<2x96xf32>
    %cst_23 = arith.constant dense<0.000000e+00> : vector<2x96xf32>
    %25 = tpu.matmul %22, %2, %cst_23 {dimension_numbers = #tpu.dot_dimension_numbers<[1], [0], [0], [1], [0, 0, 1, 1], [], []>} : vector<2x32xf32>, vector<32x96xf32>, vector<2x96xf32> -> vector<2x96xf32>
    %26 = vector.extract_strided_slice %24 {offsets = [0, 0], sizes = [2, 64], strides = [1, 1]} : vector<2x96xf32> to vector<2x64xf32>
    %27 = vector.extract_strided_slice %25 {offsets = [0, 0], sizes = [2, 64], strides = [1, 1]} : vector<2x96xf32> to vector<2x64xf32>
    %28 = arith.addf %26, %27 : vector<2x64xf32>
    %29 = arith.negf %28 : vector<2x64xf32>
    %30 = math.exp %29 : vector<2x64xf32>
    %cst_24 = arith.constant 1.000000e+00 : f32
    %31 = vector.broadcast %cst_24 : f32 to vector<2x64xf32>
    %32 = arith.addf %31, %30 : vector<2x64xf32>
    %33 = arith.divf %31, %32 : vector<2x64xf32>
    %34 = vector.extract_strided_slice %33 {offsets = [0, 0], sizes = [2, 32], strides = [1, 1]} : vector<2x64xf32> to vector<2x32xf32>
    %35 = vector.extract_strided_slice %33 {offsets = [0, 32], sizes = [2, 32], strides = [1, 1]} : vector<2x64xf32> to vector<2x32xf32>
    %36 = vector.extract_strided_slice %24 {offsets = [0, 64], sizes = [2, 32], strides = [1, 1]} : vector<2x96xf32> to vector<2x32xf32>
    %37 = vector.extract_strided_slice %25 {offsets = [0, 64], sizes = [2, 32], strides = [1, 1]} : vector<2x96xf32> to vector<2x32xf32>
    %38 = arith.addf %37, %17 : vector<2x32xf32>
    %39 = arith.mulf %34, %38 : vector<2x32xf32>
    %40 = arith.addf %36, %39 : vector<2x32xf32>
    %41 = math.tanh %40 : vector<2x32xf32>
    %cst_25 = arith.constant 1.000000e+00 : f32
    %42 = vector.broadcast %cst_25 : f32 to vector<2x32xf32>
    %43 = arith.subf %42, %35 : vector<2x32xf32>
    %44 = arith.mulf %43, %41 : vector<2x32xf32>
    %45 = arith.mulf %35, %22 : vector<2x32xf32>
    %46 = arith.addf %44, %45 : vector<2x32xf32>
    %cst_26 = arith.constant dense<0.000000e+00> : vector<2x96xf32>
    %47 = tpu.matmul %46, %1, %cst_26 {dimension_numbers = #tpu.dot_dimension_numbers<[1], [0], [0], [1], [0, 0, 1, 1], [], []>} : vector<2x32xf32>, vector<32x96xf32>, vector<2x96xf32> -> vector<2x96xf32>
    %48 = arith.addf %47, %15 : vector<2x96xf32>
    %cst_27 = arith.constant dense<0.000000e+00> : vector<2x96xf32>
    %49 = tpu.matmul %23, %3, %cst_27 {dimension_numbers = #tpu.dot_dimension_numbers<[1], [0], [0], [1], [0, 0, 1, 1], [], []>} : vector<2x32xf32>, vector<32x96xf32>, vector<2x96xf32> -> vector<2x96xf32>
    %50 = vector.extract_strided_slice %48 {offsets = [0, 0], sizes = [2, 64], strides = [1, 1]} : vector<2x96xf32> to vector<2x64xf32>
    %51 = vector.extract_strided_slice %49 {offsets = [0, 0], sizes = [2, 64], strides = [1, 1]} : vector<2x96xf32> to vector<2x64xf32>
    %52 = arith.addf %50, %51 : vector<2x64xf32>
    %53 = arith.negf %52 : vector<2x64xf32>
    %54 = math.exp %53 : vector<2x64xf32>
    %cst_28 = arith.constant 1.000000e+00 : f32
    %55 = vector.broadcast %cst_28 : f32 to vector<2x64xf32>
    %56 = arith.addf %55, %54 : vector<2x64xf32>
    %57 = arith.divf %55, %56 : vector<2x64xf32>
    %58 = vector.extract_strided_slice %57 {offsets = [0, 0], sizes = [2, 32], strides = [1, 1]} : vector<2x64xf32> to vector<2x32xf32>
    %59 = vector.extract_strided_slice %57 {offsets = [0, 32], sizes = [2, 32], strides = [1, 1]} : vector<2x64xf32> to vector<2x32xf32>
    %60 = vector.extract_strided_slice %48 {offsets = [0, 64], sizes = [2, 32], strides = [1, 1]} : vector<2x96xf32> to vector<2x32xf32>
    %61 = vector.extract_strided_slice %49 {offsets = [0, 64], sizes = [2, 32], strides = [1, 1]} : vector<2x96xf32> to vector<2x32xf32>
    %62 = arith.addf %61, %19 : vector<2x32xf32>
    %63 = arith.mulf %58, %62 : vector<2x32xf32>
    %64 = arith.addf %60, %63 : vector<2x32xf32>
    %65 = math.tanh %64 : vector<2x32xf32>
    %cst_29 = arith.constant 1.000000e+00 : f32
    %66 = vector.broadcast %cst_29 : f32 to vector<2x32xf32>
    %67 = arith.subf %66, %59 : vector<2x32xf32>
    %68 = arith.mulf %67, %65 : vector<2x32xf32>
    %69 = arith.mulf %59, %23 : vector<2x32xf32>
    %70 = arith.addf %68, %69 : vector<2x32xf32>
    %cst_30 = arith.constant dense<0.000000e+00> : vector<2x128xf32>
    %71 = tpu.matmul %70, %8, %cst_30 {dimension_numbers = #tpu.dot_dimension_numbers<[1], [0], [0], [1], [0, 0, 1, 1], [], []>} : vector<2x32xf32>, vector<32x128xf32>, vector<2x128xf32> -> vector<2x128xf32>
    %72 = arith.addf %71, %21 : vector<2x128xf32>
    %c0_31 = arith.constant 0 : index
    %c0_32 = arith.constant 0 : index
    %73 = vector.load %arg11[%c0_31, %c0_32] : memref<16x128xf32, #tpu.memory_space<vmem>>, vector<2x128xf32>
    tpu.vector_store %arg11[%c0_31, %c0_32], %72 {strides = array<i32>} : memref<16x128xf32, #tpu.memory_space<vmem>>, vector<2x128xf32>,
    %74 = vector.extract_strided_slice %13 {offsets = [2, 0], sizes = [2, 96], strides = [1, 1]} : vector<16x96xf32> to vector<2x96xf32>
    %cst_33 = arith.constant dense<0.000000e+00> : vector<2x96xf32>
    %75 = tpu.matmul %46, %2, %cst_33 {dimension_numbers = #tpu.dot_dimension_numbers<[1], [0], [0], [1], [0, 0, 1, 1], [], []>} : vector<2x32xf32>, vector<32x96xf32>, vector<2x96xf32> -> vector<2x96xf32>
    %76 = vector.extract_strided_slice %74 {offsets = [0, 0], sizes = [2, 64], strides = [1, 1]} : vector<2x96xf32> to vector<2x64xf32>
    %77 = vector.extract_strided_slice %75 {offsets = [0, 0], sizes = [2, 64], strides = [1, 1]} : vector<2x96xf32> to vector<2x64xf32>
    %78 = arith.addf %76, %77 : vector<2x64xf32>
    %79 = arith.negf %78 : vector<2x64xf32>
    %80 = math.exp %79 : vector<2x64xf32>
    %cst_34 = arith.constant 1.000000e+00 : f32
    %81 = vector.broadcast %cst_34 : f32 to vector<2x64xf32>
    %82 = arith.addf %81, %80 : vector<2x64xf32>
    %83 = arith.divf %81, %82 : vector<2x64xf32>
    %84 = vector.extract_strided_slice %83 {offsets = [0, 0], sizes = [2, 32], strides = [1, 1]} : vector<2x64xf32> to vector<2x32xf32>
    %85 = vector.extract_strided_slice %83 {offsets = [0, 32], sizes = [2, 32], strides = [1, 1]} : vector<2x64xf32> to vector<2x32xf32>
    %86 = vector.extract_strided_slice %74 {offsets = [0, 64], sizes = [2, 32], strides = [1, 1]} : vector<2x96xf32> to vector<2x32xf32>
    %87 = vector.extract_strided_slice %75 {offsets = [0, 64], sizes = [2, 32], strides = [1, 1]} : vector<2x96xf32> to vector<2x32xf32>
    %88 = arith.addf %87, %17 : vector<2x32xf32>
    %89 = arith.mulf %84, %88 : vector<2x32xf32>
    %90 = arith.addf %86, %89 : vector<2x32xf32>
    %91 = math.tanh %90 : vector<2x32xf32>
    %cst_35 = arith.constant 1.000000e+00 : f32
    %92 = vector.broadcast %cst_35 : f32 to vector<2x32xf32>
    %93 = arith.subf %92, %85 : vector<2x32xf32>
    %94 = arith.mulf %93, %91 : vector<2x32xf32>
    %95 = arith.mulf %85, %46 : vector<2x32xf32>
    %96 = arith.addf %94, %95 : vector<2x32xf32>
    %cst_36 = arith.constant dense<0.000000e+00> : vector<2x96xf32>
    %97 = tpu.matmul %96, %1, %cst_36 {dimension_numbers = #tpu.dot_dimension_numbers<[1], [0], [0], [1], [0, 0, 1, 1], [], []>} : vector<2x32xf32>, vector<32x96xf32>, vector<2x96xf32> -> vector<2x96xf32>
    %98 = arith.addf %97, %15 : vector<2x96xf32>
    %cst_37 = arith.constant dense<0.000000e+00> : vector<2x96xf32>
    %99 = tpu.matmul %70, %3, %cst_37 {dimension_numbers = #tpu.dot_dimension_numbers<[1], [0], [0], [1], [0, 0, 1, 1], [], []>} : vector<2x32xf32>, vector<32x96xf32>, vector<2x96xf32> -> vector<2x96xf32>
    %100 = vector.extract_strided_slice %98 {offsets = [0, 0], sizes = [2, 64], strides = [1, 1]} : vector<2x96xf32> to vector<2x64xf32>
    %101 = vector.extract_strided_slice %99 {offsets = [0, 0], sizes = [2, 64], strides = [1, 1]} : vector<2x96xf32> to vector<2x64xf32>
    %102 = arith.addf %100, %101 : vector<2x64xf32>
    %103 = arith.negf %102 : vector<2x64xf32>
    %104 = math.exp %103 : vector<2x64xf32>
    %cst_38 = arith.constant 1.000000e+00 : f32
    %105 = vector.broadcast %cst_38 : f32 to vector<2x64xf32>
    %106 = arith.addf %105, %104 : vector<2x64xf32>
    %107 = arith.divf %105, %106 : vector<2x64xf32>
    %108 = vector.extract_strided_slice %107 {offsets = [0, 0], sizes = [2, 32], strides = [1, 1]} : vector<2x64xf32> to vector<2x32xf32>
    %109 = vector.extract_strided_slice %107 {offsets = [0, 32], sizes = [2, 32], strides = [1, 1]} : vector<2x64xf32> to vector<2x32xf32>
    %110 = vector.extract_strided_slice %98 {offsets = [0, 64], sizes = [2, 32], strides = [1, 1]} : vector<2x96xf32> to vector<2x32xf32>
    %111 = vector.extract_strided_slice %99 {offsets = [0, 64], sizes = [2, 32], strides = [1, 1]} : vector<2x96xf32> to vector<2x32xf32>
    %112 = arith.addf %111, %19 : vector<2x32xf32>
    %113 = arith.mulf %108, %112 : vector<2x32xf32>
    %114 = arith.addf %110, %113 : vector<2x32xf32>
    %115 = math.tanh %114 : vector<2x32xf32>
    %cst_39 = arith.constant 1.000000e+00 : f32
    %116 = vector.broadcast %cst_39 : f32 to vector<2x32xf32>
    %117 = arith.subf %116, %109 : vector<2x32xf32>
    %118 = arith.mulf %117, %115 : vector<2x32xf32>
    %119 = arith.mulf %109, %70 : vector<2x32xf32>
    %120 = arith.addf %118, %119 : vector<2x32xf32>
    %cst_40 = arith.constant dense<0.000000e+00> : vector<2x128xf32>
    %121 = tpu.matmul %120, %8, %cst_40 {dimension_numbers = #tpu.dot_dimension_numbers<[1], [0], [0], [1], [0, 0, 1, 1], [], []>} : vector<2x32xf32>, vector<32x128xf32>, vector<2x128xf32> -> vector<2x128xf32>
    %122 = arith.addf %121, %21 : vector<2x128xf32>
    %c2 = arith.constant 2 : index
    %c0_41 = arith.constant 0 : index
    %123 = vector.load %arg11[%c2, %c0_41] : memref<16x128xf32, #tpu.memory_space<vmem>>, vector<2x128xf32>
    tpu.vector_store %arg11[%c2, %c0_41], %122 {strides = array<i32>} : memref<16x128xf32, #tpu.memory_space<vmem>>, vector<2x128xf32>,
    %124 = vector.extract_strided_slice %13 {offsets = [4, 0], sizes = [2, 96], strides = [1, 1]} : vector<16x96xf32> to vector<2x96xf32>
    %cst_42 = arith.constant dense<0.000000e+00> : vector<2x96xf32>
    %125 = tpu.matmul %96, %2, %cst_42 {dimension_numbers = #tpu.dot_dimension_numbers<[1], [0], [0], [1], [0, 0, 1, 1], [], []>} : vector<2x32xf32>, vector<32x96xf32>, vector<2x96xf32> -> vector<2x96xf32>
    %126 = vector.extract_strided_slice %124 {offsets = [0, 0], sizes = [2, 64], strides = [1, 1]} : vector<2x96xf32> to vector<2x64xf32>
    %127 = vector.extract_strided_slice %125 {offsets = [0, 0], sizes = [2, 64], strides = [1, 1]} : vector<2x96xf32> to vector<2x64xf32>
    %128 = arith.addf %126, %127 : vector<2x64xf32>
    %129 = arith.negf %128 : vector<2x64xf32>
    %130 = math.exp %129 : vector<2x64xf32>
    %cst_43 = arith.constant 1.000000e+00 : f32
    %131 = vector.broadcast %cst_43 : f32 to vector<2x64xf32>
    %132 = arith.addf %131, %130 : vector<2x64xf32>
    %133 = arith.divf %131, %132 : vector<2x64xf32>
    %134 = vector.extract_strided_slice %133 {offsets = [0, 0], sizes = [2, 32], strides = [1, 1]} : vector<2x64xf32> to vector<2x32xf32>
    %135 = vector.extract_strided_slice %133 {offsets = [0, 32], sizes = [2, 32], strides = [1, 1]} : vector<2x64xf32> to vector<2x32xf32>
    %136 = vector.extract_strided_slice %124 {offsets = [0, 64], sizes = [2, 32], strides = [1, 1]} : vector<2x96xf32> to vector<2x32xf32>
    %137 = vector.extract_strided_slice %125 {offsets = [0, 64], sizes = [2, 32], strides = [1, 1]} : vector<2x96xf32> to vector<2x32xf32>
    %138 = arith.addf %137, %17 : vector<2x32xf32>
    %139 = arith.mulf %134, %138 : vector<2x32xf32>
    %140 = arith.addf %136, %139 : vector<2x32xf32>
    %141 = math.tanh %140 : vector<2x32xf32>
    %cst_44 = arith.constant 1.000000e+00 : f32
    %142 = vector.broadcast %cst_44 : f32 to vector<2x32xf32>
    %143 = arith.subf %142, %135 : vector<2x32xf32>
    %144 = arith.mulf %143, %141 : vector<2x32xf32>
    %145 = arith.mulf %135, %96 : vector<2x32xf32>
    %146 = arith.addf %144, %145 : vector<2x32xf32>
    %cst_45 = arith.constant dense<0.000000e+00> : vector<2x96xf32>
    %147 = tpu.matmul %146, %1, %cst_45 {dimension_numbers = #tpu.dot_dimension_numbers<[1], [0], [0], [1], [0, 0, 1, 1], [], []>} : vector<2x32xf32>, vector<32x96xf32>, vector<2x96xf32> -> vector<2x96xf32>
    %148 = arith.addf %147, %15 : vector<2x96xf32>
    %cst_46 = arith.constant dense<0.000000e+00> : vector<2x96xf32>
    %149 = tpu.matmul %120, %3, %cst_46 {dimension_numbers = #tpu.dot_dimension_numbers<[1], [0], [0], [1], [0, 0, 1, 1], [], []>} : vector<2x32xf32>, vector<32x96xf32>, vector<2x96xf32> -> vector<2x96xf32>
    %150 = vector.extract_strided_slice %148 {offsets = [0, 0], sizes = [2, 64], strides = [1, 1]} : vector<2x96xf32> to vector<2x64xf32>
    %151 = vector.extract_strided_slice %149 {offsets = [0, 0], sizes = [2, 64], strides = [1, 1]} : vector<2x96xf32> to vector<2x64xf32>
    %152 = arith.addf %150, %151 : vector<2x64xf32>
    %153 = arith.negf %152 : vector<2x64xf32>
    %154 = math.exp %153 : vector<2x64xf32>
    %cst_47 = arith.constant 1.000000e+00 : f32
    %155 = vector.broadcast %cst_47 : f32 to vector<2x64xf32>
    %156 = arith.addf %155, %154 : vector<2x64xf32>
    %157 = arith.divf %155, %156 : vector<2x64xf32>
    %158 = vector.extract_strided_slice %157 {offsets = [0, 0], sizes = [2, 32], strides = [1, 1]} : vector<2x64xf32> to vector<2x32xf32>
    %159 = vector.extract_strided_slice %157 {offsets = [0, 32], sizes = [2, 32], strides = [1, 1]} : vector<2x64xf32> to vector<2x32xf32>
    %160 = vector.extract_strided_slice %148 {offsets = [0, 64], sizes = [2, 32], strides = [1, 1]} : vector<2x96xf32> to vector<2x32xf32>
    %161 = vector.extract_strided_slice %149 {offsets = [0, 64], sizes = [2, 32], strides = [1, 1]} : vector<2x96xf32> to vector<2x32xf32>
    %162 = arith.addf %161, %19 : vector<2x32xf32>
    %163 = arith.mulf %158, %162 : vector<2x32xf32>
    %164 = arith.addf %160, %163 : vector<2x32xf32>
    %165 = math.tanh %164 : vector<2x32xf32>
    %cst_48 = arith.constant 1.000000e+00 : f32
    %166 = vector.broadcast %cst_48 : f32 to vector<2x32xf32>
    %167 = arith.subf %166, %159 : vector<2x32xf32>
    %168 = arith.mulf %167, %165 : vector<2x32xf32>
    %169 = arith.mulf %159, %120 : vector<2x32xf32>
    %170 = arith.addf %168, %169 : vector<2x32xf32>
    %cst_49 = arith.constant dense<0.000000e+00> : vector<2x128xf32>
    %171 = tpu.matmul %170, %8, %cst_49 {dimension_numbers = #tpu.dot_dimension_numbers<[1], [0], [0], [1], [0, 0, 1, 1], [], []>} : vector<2x32xf32>, vector<32x128xf32>, vector<2x128xf32> -> vector<2x128xf32>
    %172 = arith.addf %171, %21 : vector<2x128xf32>
    %c4 = arith.constant 4 : index
    %c0_50 = arith.constant 0 : index
    %173 = vector.load %arg11[%c4, %c0_50] : memref<16x128xf32, #tpu.memory_space<vmem>>, vector<2x128xf32>
    tpu.vector_store %arg11[%c4, %c0_50], %172 {strides = array<i32>} : memref<16x128xf32, #tpu.memory_space<vmem>>, vector<2x128xf32>,
    %174 = vector.extract_strided_slice %13 {offsets = [6, 0], sizes = [2, 96], strides = [1, 1]} : vector<16x96xf32> to vector<2x96xf32>
    %cst_51 = arith.constant dense<0.000000e+00> : vector<2x96xf32>
    %175 = tpu.matmul %146, %2, %cst_51 {dimension_numbers = #tpu.dot_dimension_numbers<[1], [0], [0], [1], [0, 0, 1, 1], [], []>} : vector<2x32xf32>, vector<32x96xf32>, vector<2x96xf32> -> vector<2x96xf32>
    %176 = vector.extract_strided_slice %174 {offsets = [0, 0], sizes = [2, 64], strides = [1, 1]} : vector<2x96xf32> to vector<2x64xf32>
    %177 = vector.extract_strided_slice %175 {offsets = [0, 0], sizes = [2, 64], strides = [1, 1]} : vector<2x96xf32> to vector<2x64xf32>
    %178 = arith.addf %176, %177 : vector<2x64xf32>
    %179 = arith.negf %178 : vector<2x64xf32>
    %180 = math.exp %179 : vector<2x64xf32>
    %cst_52 = arith.constant 1.000000e+00 : f32
    %181 = vector.broadcast %cst_52 : f32 to vector<2x64xf32>
    %182 = arith.addf %181, %180 : vector<2x64xf32>
    %183 = arith.divf %181, %182 : vector<2x64xf32>
    %184 = vector.extract_strided_slice %183 {offsets = [0, 0], sizes = [2, 32], strides = [1, 1]} : vector<2x64xf32> to vector<2x32xf32>
    %185 = vector.extract_strided_slice %183 {offsets = [0, 32], sizes = [2, 32], strides = [1, 1]} : vector<2x64xf32> to vector<2x32xf32>
    %186 = vector.extract_strided_slice %174 {offsets = [0, 64], sizes = [2, 32], strides = [1, 1]} : vector<2x96xf32> to vector<2x32xf32>
    %187 = vector.extract_strided_slice %175 {offsets = [0, 64], sizes = [2, 32], strides = [1, 1]} : vector<2x96xf32> to vector<2x32xf32>
    %188 = arith.addf %187, %17 : vector<2x32xf32>
    %189 = arith.mulf %184, %188 : vector<2x32xf32>
    %190 = arith.addf %186, %189 : vector<2x32xf32>
    %191 = math.tanh %190 : vector<2x32xf32>
    %cst_53 = arith.constant 1.000000e+00 : f32
    %192 = vector.broadcast %cst_53 : f32 to vector<2x32xf32>
    %193 = arith.subf %192, %185 : vector<2x32xf32>
    %194 = arith.mulf %193, %191 : vector<2x32xf32>
    %195 = arith.mulf %185, %146 : vector<2x32xf32>
    %196 = arith.addf %194, %195 : vector<2x32xf32>
    %cst_54 = arith.constant dense<0.000000e+00> : vector<2x96xf32>
    %197 = tpu.matmul %196, %1, %cst_54 {dimension_numbers = #tpu.dot_dimension_numbers<[1], [0], [0], [1], [0, 0, 1, 1], [], []>} : vector<2x32xf32>, vector<32x96xf32>, vector<2x96xf32> -> vector<2x96xf32>
    %198 = arith.addf %197, %15 : vector<2x96xf32>
    %cst_55 = arith.constant dense<0.000000e+00> : vector<2x96xf32>
    %199 = tpu.matmul %170, %3, %cst_55 {dimension_numbers = #tpu.dot_dimension_numbers<[1], [0], [0], [1], [0, 0, 1, 1], [], []>} : vector<2x32xf32>, vector<32x96xf32>, vector<2x96xf32> -> vector<2x96xf32>
    %200 = vector.extract_strided_slice %198 {offsets = [0, 0], sizes = [2, 64], strides = [1, 1]} : vector<2x96xf32> to vector<2x64xf32>
    %201 = vector.extract_strided_slice %199 {offsets = [0, 0], sizes = [2, 64], strides = [1, 1]} : vector<2x96xf32> to vector<2x64xf32>
    %202 = arith.addf %200, %201 : vector<2x64xf32>
    %203 = arith.negf %202 : vector<2x64xf32>
    %204 = math.exp %203 : vector<2x64xf32>
    %cst_56 = arith.constant 1.000000e+00 : f32
    %205 = vector.broadcast %cst_56 : f32 to vector<2x64xf32>
    %206 = arith.addf %205, %204 : vector<2x64xf32>
    %207 = arith.divf %205, %206 : vector<2x64xf32>
    %208 = vector.extract_strided_slice %207 {offsets = [0, 0], sizes = [2, 32], strides = [1, 1]} : vector<2x64xf32> to vector<2x32xf32>
    %209 = vector.extract_strided_slice %207 {offsets = [0, 32], sizes = [2, 32], strides = [1, 1]} : vector<2x64xf32> to vector<2x32xf32>
    %210 = vector.extract_strided_slice %198 {offsets = [0, 64], sizes = [2, 32], strides = [1, 1]} : vector<2x96xf32> to vector<2x32xf32>
    %211 = vector.extract_strided_slice %199 {offsets = [0, 64], sizes = [2, 32], strides = [1, 1]} : vector<2x96xf32> to vector<2x32xf32>
    %212 = arith.addf %211, %19 : vector<2x32xf32>
    %213 = arith.mulf %208, %212 : vector<2x32xf32>
    %214 = arith.addf %210, %213 : vector<2x32xf32>
    %215 = math.tanh %214 : vector<2x32xf32>
    %cst_57 = arith.constant 1.000000e+00 : f32
    %216 = vector.broadcast %cst_57 : f32 to vector<2x32xf32>
    %217 = arith.subf %216, %209 : vector<2x32xf32>
    %218 = arith.mulf %217, %215 : vector<2x32xf32>
    %219 = arith.mulf %209, %170 : vector<2x32xf32>
    %220 = arith.addf %218, %219 : vector<2x32xf32>
    %cst_58 = arith.constant dense<0.000000e+00> : vector<2x128xf32>
    %221 = tpu.matmul %220, %8, %cst_58 {dimension_numbers = #tpu.dot_dimension_numbers<[1], [0], [0], [1], [0, 0, 1, 1], [], []>} : vector<2x32xf32>, vector<32x128xf32>, vector<2x128xf32> -> vector<2x128xf32>
    %222 = arith.addf %221, %21 : vector<2x128xf32>
    %c6 = arith.constant 6 : index
    %c0_59 = arith.constant 0 : index
    %223 = vector.load %arg11[%c6, %c0_59] : memref<16x128xf32, #tpu.memory_space<vmem>>, vector<2x128xf32>
    tpu.vector_store %arg11[%c6, %c0_59], %222 {strides = array<i32>} : memref<16x128xf32, #tpu.memory_space<vmem>>, vector<2x128xf32>,
    %224 = vector.extract_strided_slice %13 {offsets = [8, 0], sizes = [2, 96], strides = [1, 1]} : vector<16x96xf32> to vector<2x96xf32>
    %cst_60 = arith.constant dense<0.000000e+00> : vector<2x96xf32>
    %225 = tpu.matmul %196, %2, %cst_60 {dimension_numbers = #tpu.dot_dimension_numbers<[1], [0], [0], [1], [0, 0, 1, 1], [], []>} : vector<2x32xf32>, vector<32x96xf32>, vector<2x96xf32> -> vector<2x96xf32>
    %226 = vector.extract_strided_slice %224 {offsets = [0, 0], sizes = [2, 64], strides = [1, 1]} : vector<2x96xf32> to vector<2x64xf32>
    %227 = vector.extract_strided_slice %225 {offsets = [0, 0], sizes = [2, 64], strides = [1, 1]} : vector<2x96xf32> to vector<2x64xf32>
    %228 = arith.addf %226, %227 : vector<2x64xf32>
    %229 = arith.negf %228 : vector<2x64xf32>
    %230 = math.exp %229 : vector<2x64xf32>
    %cst_61 = arith.constant 1.000000e+00 : f32
    %231 = vector.broadcast %cst_61 : f32 to vector<2x64xf32>
    %232 = arith.addf %231, %230 : vector<2x64xf32>
    %233 = arith.divf %231, %232 : vector<2x64xf32>
    %234 = vector.extract_strided_slice %233 {offsets = [0, 0], sizes = [2, 32], strides = [1, 1]} : vector<2x64xf32> to vector<2x32xf32>
    %235 = vector.extract_strided_slice %233 {offsets = [0, 32], sizes = [2, 32], strides = [1, 1]} : vector<2x64xf32> to vector<2x32xf32>
    %236 = vector.extract_strided_slice %224 {offsets = [0, 64], sizes = [2, 32], strides = [1, 1]} : vector<2x96xf32> to vector<2x32xf32>
    %237 = vector.extract_strided_slice %225 {offsets = [0, 64], sizes = [2, 32], strides = [1, 1]} : vector<2x96xf32> to vector<2x32xf32>
    %238 = arith.addf %237, %17 : vector<2x32xf32>
    %239 = arith.mulf %234, %238 : vector<2x32xf32>
    %240 = arith.addf %236, %239 : vector<2x32xf32>
    %241 = math.tanh %240 : vector<2x32xf32>
    %cst_62 = arith.constant 1.000000e+00 : f32
    %242 = vector.broadcast %cst_62 : f32 to vector<2x32xf32>
    %243 = arith.subf %242, %235 : vector<2x32xf32>
    %244 = arith.mulf %243, %241 : vector<2x32xf32>
    %245 = arith.mulf %235, %196 : vector<2x32xf32>
    %246 = arith.addf %244, %245 : vector<2x32xf32>
    %cst_63 = arith.constant dense<0.000000e+00> : vector<2x96xf32>
    %247 = tpu.matmul %246, %1, %cst_63 {dimension_numbers = #tpu.dot_dimension_numbers<[1], [0], [0], [1], [0, 0, 1, 1], [], []>} : vector<2x32xf32>, vector<32x96xf32>, vector<2x96xf32> -> vector<2x96xf32>
    %248 = arith.addf %247, %15 : vector<2x96xf32>
    %cst_64 = arith.constant dense<0.000000e+00> : vector<2x96xf32>
    %249 = tpu.matmul %220, %3, %cst_64 {dimension_numbers = #tpu.dot_dimension_numbers<[1], [0], [0], [1], [0, 0, 1, 1], [], []>} : vector<2x32xf32>, vector<32x96xf32>, vector<2x96xf32> -> vector<2x96xf32>
    %250 = vector.extract_strided_slice %248 {offsets = [0, 0], sizes = [2, 64], strides = [1, 1]} : vector<2x96xf32> to vector<2x64xf32>
    %251 = vector.extract_strided_slice %249 {offsets = [0, 0], sizes = [2, 64], strides = [1, 1]} : vector<2x96xf32> to vector<2x64xf32>
    %252 = arith.addf %250, %251 : vector<2x64xf32>
    %253 = arith.negf %252 : vector<2x64xf32>
    %254 = math.exp %253 : vector<2x64xf32>
    %cst_65 = arith.constant 1.000000e+00 : f32
    %255 = vector.broadcast %cst_65 : f32 to vector<2x64xf32>
    %256 = arith.addf %255, %254 : vector<2x64xf32>
    %257 = arith.divf %255, %256 : vector<2x64xf32>
    %258 = vector.extract_strided_slice %257 {offsets = [0, 0], sizes = [2, 32], strides = [1, 1]} : vector<2x64xf32> to vector<2x32xf32>
    %259 = vector.extract_strided_slice %257 {offsets = [0, 32], sizes = [2, 32], strides = [1, 1]} : vector<2x64xf32> to vector<2x32xf32>
    %260 = vector.extract_strided_slice %248 {offsets = [0, 64], sizes = [2, 32], strides = [1, 1]} : vector<2x96xf32> to vector<2x32xf32>
    %261 = vector.extract_strided_slice %249 {offsets = [0, 64], sizes = [2, 32], strides = [1, 1]} : vector<2x96xf32> to vector<2x32xf32>
    %262 = arith.addf %261, %19 : vector<2x32xf32>
    %263 = arith.mulf %258, %262 : vector<2x32xf32>
    %264 = arith.addf %260, %263 : vector<2x32xf32>
    %265 = math.tanh %264 : vector<2x32xf32>
    %cst_66 = arith.constant 1.000000e+00 : f32
    %266 = vector.broadcast %cst_66 : f32 to vector<2x32xf32>
    %267 = arith.subf %266, %259 : vector<2x32xf32>
    %268 = arith.mulf %267, %265 : vector<2x32xf32>
    %269 = arith.mulf %259, %220 : vector<2x32xf32>
    %270 = arith.addf %268, %269 : vector<2x32xf32>
    %cst_67 = arith.constant dense<0.000000e+00> : vector<2x128xf32>
    %271 = tpu.matmul %270, %8, %cst_67 {dimension_numbers = #tpu.dot_dimension_numbers<[1], [0], [0], [1], [0, 0, 1, 1], [], []>} : vector<2x32xf32>, vector<32x128xf32>, vector<2x128xf32> -> vector<2x128xf32>
    %272 = arith.addf %271, %21 : vector<2x128xf32>
    %c8 = arith.constant 8 : index
    %c0_68 = arith.constant 0 : index
    %273 = vector.load %arg11[%c8, %c0_68] : memref<16x128xf32, #tpu.memory_space<vmem>>, vector<2x128xf32>
    tpu.vector_store %arg11[%c8, %c0_68], %272 {strides = array<i32>} : memref<16x128xf32, #tpu.memory_space<vmem>>, vector<2x128xf32>,
    %274 = vector.extract_strided_slice %13 {offsets = [10, 0], sizes = [2, 96], strides = [1, 1]} : vector<16x96xf32> to vector<2x96xf32>
    %cst_69 = arith.constant dense<0.000000e+00> : vector<2x96xf32>
    %275 = tpu.matmul %246, %2, %cst_69 {dimension_numbers = #tpu.dot_dimension_numbers<[1], [0], [0], [1], [0, 0, 1, 1], [], []>} : vector<2x32xf32>, vector<32x96xf32>, vector<2x96xf32> -> vector<2x96xf32>
    %276 = vector.extract_strided_slice %274 {offsets = [0, 0], sizes = [2, 64], strides = [1, 1]} : vector<2x96xf32> to vector<2x64xf32>
    %277 = vector.extract_strided_slice %275 {offsets = [0, 0], sizes = [2, 64], strides = [1, 1]} : vector<2x96xf32> to vector<2x64xf32>
    %278 = arith.addf %276, %277 : vector<2x64xf32>
    %279 = arith.negf %278 : vector<2x64xf32>
    %280 = math.exp %279 : vector<2x64xf32>
    %cst_70 = arith.constant 1.000000e+00 : f32
    %281 = vector.broadcast %cst_70 : f32 to vector<2x64xf32>
    %282 = arith.addf %281, %280 : vector<2x64xf32>
    %283 = arith.divf %281, %282 : vector<2x64xf32>
    %284 = vector.extract_strided_slice %283 {offsets = [0, 0], sizes = [2, 32], strides = [1, 1]} : vector<2x64xf32> to vector<2x32xf32>
    %285 = vector.extract_strided_slice %283 {offsets = [0, 32], sizes = [2, 32], strides = [1, 1]} : vector<2x64xf32> to vector<2x32xf32>
    %286 = vector.extract_strided_slice %274 {offsets = [0, 64], sizes = [2, 32], strides = [1, 1]} : vector<2x96xf32> to vector<2x32xf32>
    %287 = vector.extract_strided_slice %275 {offsets = [0, 64], sizes = [2, 32], strides = [1, 1]} : vector<2x96xf32> to vector<2x32xf32>
    %288 = arith.addf %287, %17 : vector<2x32xf32>
    %289 = arith.mulf %284, %288 : vector<2x32xf32>
    %290 = arith.addf %286, %289 : vector<2x32xf32>
    %291 = math.tanh %290 : vector<2x32xf32>
    %cst_71 = arith.constant 1.000000e+00 : f32
    %292 = vector.broadcast %cst_71 : f32 to vector<2x32xf32>
    %293 = arith.subf %292, %285 : vector<2x32xf32>
    %294 = arith.mulf %293, %291 : vector<2x32xf32>
    %295 = arith.mulf %285, %246 : vector<2x32xf32>
    %296 = arith.addf %294, %295 : vector<2x32xf32>
    %cst_72 = arith.constant dense<0.000000e+00> : vector<2x96xf32>
    %297 = tpu.matmul %296, %1, %cst_72 {dimension_numbers = #tpu.dot_dimension_numbers<[1], [0], [0], [1], [0, 0, 1, 1], [], []>} : vector<2x32xf32>, vector<32x96xf32>, vector<2x96xf32> -> vector<2x96xf32>
    %298 = arith.addf %297, %15 : vector<2x96xf32>
    %cst_73 = arith.constant dense<0.000000e+00> : vector<2x96xf32>
    %299 = tpu.matmul %270, %3, %cst_73 {dimension_numbers = #tpu.dot_dimension_numbers<[1], [0], [0], [1], [0, 0, 1, 1], [], []>} : vector<2x32xf32>, vector<32x96xf32>, vector<2x96xf32> -> vector<2x96xf32>
    %300 = vector.extract_strided_slice %298 {offsets = [0, 0], sizes = [2, 64], strides = [1, 1]} : vector<2x96xf32> to vector<2x64xf32>
    %301 = vector.extract_strided_slice %299 {offsets = [0, 0], sizes = [2, 64], strides = [1, 1]} : vector<2x96xf32> to vector<2x64xf32>
    %302 = arith.addf %300, %301 : vector<2x64xf32>
    %303 = arith.negf %302 : vector<2x64xf32>
    %304 = math.exp %303 : vector<2x64xf32>
    %cst_74 = arith.constant 1.000000e+00 : f32
    %305 = vector.broadcast %cst_74 : f32 to vector<2x64xf32>
    %306 = arith.addf %305, %304 : vector<2x64xf32>
    %307 = arith.divf %305, %306 : vector<2x64xf32>
    %308 = vector.extract_strided_slice %307 {offsets = [0, 0], sizes = [2, 32], strides = [1, 1]} : vector<2x64xf32> to vector<2x32xf32>
    %309 = vector.extract_strided_slice %307 {offsets = [0, 32], sizes = [2, 32], strides = [1, 1]} : vector<2x64xf32> to vector<2x32xf32>
    %310 = vector.extract_strided_slice %298 {offsets = [0, 64], sizes = [2, 32], strides = [1, 1]} : vector<2x96xf32> to vector<2x32xf32>
    %311 = vector.extract_strided_slice %299 {offsets = [0, 64], sizes = [2, 32], strides = [1, 1]} : vector<2x96xf32> to vector<2x32xf32>
    %312 = arith.addf %311, %19 : vector<2x32xf32>
    %313 = arith.mulf %308, %312 : vector<2x32xf32>
    %314 = arith.addf %310, %313 : vector<2x32xf32>
    %315 = math.tanh %314 : vector<2x32xf32>
    %cst_75 = arith.constant 1.000000e+00 : f32
    %316 = vector.broadcast %cst_75 : f32 to vector<2x32xf32>
    %317 = arith.subf %316, %309 : vector<2x32xf32>
    %318 = arith.mulf %317, %315 : vector<2x32xf32>
    %319 = arith.mulf %309, %270 : vector<2x32xf32>
    %320 = arith.addf %318, %319 : vector<2x32xf32>
    %cst_76 = arith.constant dense<0.000000e+00> : vector<2x128xf32>
    %321 = tpu.matmul %320, %8, %cst_76 {dimension_numbers = #tpu.dot_dimension_numbers<[1], [0], [0], [1], [0, 0, 1, 1], [], []>} : vector<2x32xf32>, vector<32x128xf32>, vector<2x128xf32> -> vector<2x128xf32>
    %322 = arith.addf %321, %21 : vector<2x128xf32>
    %c10 = arith.constant 10 : index
    %c0_77 = arith.constant 0 : index
    %323 = vector.load %arg11[%c10, %c0_77] : memref<16x128xf32, #tpu.memory_space<vmem>>, vector<2x128xf32>
    tpu.vector_store %arg11[%c10, %c0_77], %322 {strides = array<i32>} : memref<16x128xf32, #tpu.memory_space<vmem>>, vector<2x128xf32>,
    %324 = vector.extract_strided_slice %13 {offsets = [12, 0], sizes = [2, 96], strides = [1, 1]} : vector<16x96xf32> to vector<2x96xf32>
    %cst_78 = arith.constant dense<0.000000e+00> : vector<2x96xf32>
    %325 = tpu.matmul %296, %2, %cst_78 {dimension_numbers = #tpu.dot_dimension_numbers<[1], [0], [0], [1], [0, 0, 1, 1], [], []>} : vector<2x32xf32>, vector<32x96xf32>, vector<2x96xf32> -> vector<2x96xf32>
    %326 = vector.extract_strided_slice %324 {offsets = [0, 0], sizes = [2, 64], strides = [1, 1]} : vector<2x96xf32> to vector<2x64xf32>
    %327 = vector.extract_strided_slice %325 {offsets = [0, 0], sizes = [2, 64], strides = [1, 1]} : vector<2x96xf32> to vector<2x64xf32>
    %328 = arith.addf %326, %327 : vector<2x64xf32>
    %329 = arith.negf %328 : vector<2x64xf32>
    %330 = math.exp %329 : vector<2x64xf32>
    %cst_79 = arith.constant 1.000000e+00 : f32
    %331 = vector.broadcast %cst_79 : f32 to vector<2x64xf32>
    %332 = arith.addf %331, %330 : vector<2x64xf32>
    %333 = arith.divf %331, %332 : vector<2x64xf32>
    %334 = vector.extract_strided_slice %333 {offsets = [0, 0], sizes = [2, 32], strides = [1, 1]} : vector<2x64xf32> to vector<2x32xf32>
    %335 = vector.extract_strided_slice %333 {offsets = [0, 32], sizes = [2, 32], strides = [1, 1]} : vector<2x64xf32> to vector<2x32xf32>
    %336 = vector.extract_strided_slice %324 {offsets = [0, 64], sizes = [2, 32], strides = [1, 1]} : vector<2x96xf32> to vector<2x32xf32>
    %337 = vector.extract_strided_slice %325 {offsets = [0, 64], sizes = [2, 32], strides = [1, 1]} : vector<2x96xf32> to vector<2x32xf32>
    %338 = arith.addf %337, %17 : vector<2x32xf32>
    %339 = arith.mulf %334, %338 : vector<2x32xf32>
    %340 = arith.addf %336, %339 : vector<2x32xf32>
    %341 = math.tanh %340 : vector<2x32xf32>
    %cst_80 = arith.constant 1.000000e+00 : f32
    %342 = vector.broadcast %cst_80 : f32 to vector<2x32xf32>
    %343 = arith.subf %342, %335 : vector<2x32xf32>
    %344 = arith.mulf %343, %341 : vector<2x32xf32>
    %345 = arith.mulf %335, %296 : vector<2x32xf32>
    %346 = arith.addf %344, %345 : vector<2x32xf32>
    %cst_81 = arith.constant dense<0.000000e+00> : vector<2x96xf32>
    %347 = tpu.matmul %346, %1, %cst_81 {dimension_numbers = #tpu.dot_dimension_numbers<[1], [0], [0], [1], [0, 0, 1, 1], [], []>} : vector<2x32xf32>, vector<32x96xf32>, vector<2x96xf32> -> vector<2x96xf32>
    %348 = arith.addf %347, %15 : vector<2x96xf32>
    %cst_82 = arith.constant dense<0.000000e+00> : vector<2x96xf32>
    %349 = tpu.matmul %320, %3, %cst_82 {dimension_numbers = #tpu.dot_dimension_numbers<[1], [0], [0], [1], [0, 0, 1, 1], [], []>} : vector<2x32xf32>, vector<32x96xf32>, vector<2x96xf32> -> vector<2x96xf32>
    %350 = vector.extract_strided_slice %348 {offsets = [0, 0], sizes = [2, 64], strides = [1, 1]} : vector<2x96xf32> to vector<2x64xf32>
    %351 = vector.extract_strided_slice %349 {offsets = [0, 0], sizes = [2, 64], strides = [1, 1]} : vector<2x96xf32> to vector<2x64xf32>
    %352 = arith.addf %350, %351 : vector<2x64xf32>
    %353 = arith.negf %352 : vector<2x64xf32>
    %354 = math.exp %353 : vector<2x64xf32>
    %cst_83 = arith.constant 1.000000e+00 : f32
    %355 = vector.broadcast %cst_83 : f32 to vector<2x64xf32>
    %356 = arith.addf %355, %354 : vector<2x64xf32>
    %357 = arith.divf %355, %356 : vector<2x64xf32>
    %358 = vector.extract_strided_slice %357 {offsets = [0, 0], sizes = [2, 32], strides = [1, 1]} : vector<2x64xf32> to vector<2x32xf32>
    %359 = vector.extract_strided_slice %357 {offsets = [0, 32], sizes = [2, 32], strides = [1, 1]} : vector<2x64xf32> to vector<2x32xf32>
    %360 = vector.extract_strided_slice %348 {offsets = [0, 64], sizes = [2, 32], strides = [1, 1]} : vector<2x96xf32> to vector<2x32xf32>
    %361 = vector.extract_strided_slice %349 {offsets = [0, 64], sizes = [2, 32], strides = [1, 1]} : vector<2x96xf32> to vector<2x32xf32>
    %362 = arith.addf %361, %19 : vector<2x32xf32>
    %363 = arith.mulf %358, %362 : vector<2x32xf32>
    %364 = arith.addf %360, %363 : vector<2x32xf32>
    %365 = math.tanh %364 : vector<2x32xf32>
    %cst_84 = arith.constant 1.000000e+00 : f32
    %366 = vector.broadcast %cst_84 : f32 to vector<2x32xf32>
    %367 = arith.subf %366, %359 : vector<2x32xf32>
    %368 = arith.mulf %367, %365 : vector<2x32xf32>
    %369 = arith.mulf %359, %320 : vector<2x32xf32>
    %370 = arith.addf %368, %369 : vector<2x32xf32>
    %cst_85 = arith.constant dense<0.000000e+00> : vector<2x128xf32>
    %371 = tpu.matmul %370, %8, %cst_85 {dimension_numbers = #tpu.dot_dimension_numbers<[1], [0], [0], [1], [0, 0, 1, 1], [], []>} : vector<2x32xf32>, vector<32x128xf32>, vector<2x128xf32> -> vector<2x128xf32>
    %372 = arith.addf %371, %21 : vector<2x128xf32>
    %c12 = arith.constant 12 : index
    %c0_86 = arith.constant 0 : index
    %373 = vector.load %arg11[%c12, %c0_86] : memref<16x128xf32, #tpu.memory_space<vmem>>, vector<2x128xf32>
    tpu.vector_store %arg11[%c12, %c0_86], %372 {strides = array<i32>} : memref<16x128xf32, #tpu.memory_space<vmem>>, vector<2x128xf32>,
    %374 = vector.extract_strided_slice %13 {offsets = [14, 0], sizes = [2, 96], strides = [1, 1]} : vector<16x96xf32> to vector<2x96xf32>
    %cst_87 = arith.constant dense<0.000000e+00> : vector<2x96xf32>
    %375 = tpu.matmul %346, %2, %cst_87 {dimension_numbers = #tpu.dot_dimension_numbers<[1], [0], [0], [1], [0, 0, 1, 1], [], []>} : vector<2x32xf32>, vector<32x96xf32>, vector<2x96xf32> -> vector<2x96xf32>
    %376 = vector.extract_strided_slice %374 {offsets = [0, 0], sizes = [2, 64], strides = [1, 1]} : vector<2x96xf32> to vector<2x64xf32>
    %377 = vector.extract_strided_slice %375 {offsets = [0, 0], sizes = [2, 64], strides = [1, 1]} : vector<2x96xf32> to vector<2x64xf32>
    %378 = arith.addf %376, %377 : vector<2x64xf32>
    %379 = arith.negf %378 : vector<2x64xf32>
    %380 = math.exp %379 : vector<2x64xf32>
    %cst_88 = arith.constant 1.000000e+00 : f32
    %381 = vector.broadcast %cst_88 : f32 to vector<2x64xf32>
    %382 = arith.addf %381, %380 : vector<2x64xf32>
    %383 = arith.divf %381, %382 : vector<2x64xf32>
    %384 = vector.extract_strided_slice %383 {offsets = [0, 0], sizes = [2, 32], strides = [1, 1]} : vector<2x64xf32> to vector<2x32xf32>
    %385 = vector.extract_strided_slice %383 {offsets = [0, 32], sizes = [2, 32], strides = [1, 1]} : vector<2x64xf32> to vector<2x32xf32>
    %386 = vector.extract_strided_slice %374 {offsets = [0, 64], sizes = [2, 32], strides = [1, 1]} : vector<2x96xf32> to vector<2x32xf32>
    %387 = vector.extract_strided_slice %375 {offsets = [0, 64], sizes = [2, 32], strides = [1, 1]} : vector<2x96xf32> to vector<2x32xf32>
    %388 = arith.addf %387, %17 : vector<2x32xf32>
    %389 = arith.mulf %384, %388 : vector<2x32xf32>
    %390 = arith.addf %386, %389 : vector<2x32xf32>
    %391 = math.tanh %390 : vector<2x32xf32>
    %cst_89 = arith.constant 1.000000e+00 : f32
    %392 = vector.broadcast %cst_89 : f32 to vector<2x32xf32>
    %393 = arith.subf %392, %385 : vector<2x32xf32>
    %394 = arith.mulf %393, %391 : vector<2x32xf32>
    %395 = arith.mulf %385, %346 : vector<2x32xf32>
    %396 = arith.addf %394, %395 : vector<2x32xf32>
    %cst_90 = arith.constant dense<0.000000e+00> : vector<2x96xf32>
    %397 = tpu.matmul %396, %1, %cst_90 {dimension_numbers = #tpu.dot_dimension_numbers<[1], [0], [0], [1], [0, 0, 1, 1], [], []>} : vector<2x32xf32>, vector<32x96xf32>, vector<2x96xf32> -> vector<2x96xf32>
    %398 = arith.addf %397, %15 : vector<2x96xf32>
    %cst_91 = arith.constant dense<0.000000e+00> : vector<2x96xf32>
    %399 = tpu.matmul %370, %3, %cst_91 {dimension_numbers = #tpu.dot_dimension_numbers<[1], [0], [0], [1], [0, 0, 1, 1], [], []>} : vector<2x32xf32>, vector<32x96xf32>, vector<2x96xf32> -> vector<2x96xf32>
    %400 = vector.extract_strided_slice %398 {offsets = [0, 0], sizes = [2, 64], strides = [1, 1]} : vector<2x96xf32> to vector<2x64xf32>
    %401 = vector.extract_strided_slice %399 {offsets = [0, 0], sizes = [2, 64], strides = [1, 1]} : vector<2x96xf32> to vector<2x64xf32>
    %402 = arith.addf %400, %401 : vector<2x64xf32>
    %403 = arith.negf %402 : vector<2x64xf32>
    %404 = math.exp %403 : vector<2x64xf32>
    %cst_92 = arith.constant 1.000000e+00 : f32
    %405 = vector.broadcast %cst_92 : f32 to vector<2x64xf32>
    %406 = arith.addf %405, %404 : vector<2x64xf32>
    %407 = arith.divf %405, %406 : vector<2x64xf32>
    %408 = vector.extract_strided_slice %407 {offsets = [0, 0], sizes = [2, 32], strides = [1, 1]} : vector<2x64xf32> to vector<2x32xf32>
    %409 = vector.extract_strided_slice %407 {offsets = [0, 32], sizes = [2, 32], strides = [1, 1]} : vector<2x64xf32> to vector<2x32xf32>
    %410 = vector.extract_strided_slice %398 {offsets = [0, 64], sizes = [2, 32], strides = [1, 1]} : vector<2x96xf32> to vector<2x32xf32>
    %411 = vector.extract_strided_slice %399 {offsets = [0, 64], sizes = [2, 32], strides = [1, 1]} : vector<2x96xf32> to vector<2x32xf32>
    %412 = arith.addf %411, %19 : vector<2x32xf32>
    %413 = arith.mulf %408, %412 : vector<2x32xf32>
    %414 = arith.addf %410, %413 : vector<2x32xf32>
    %415 = math.tanh %414 : vector<2x32xf32>
    %cst_93 = arith.constant 1.000000e+00 : f32
    %416 = vector.broadcast %cst_93 : f32 to vector<2x32xf32>
    %417 = arith.subf %416, %409 : vector<2x32xf32>
    %418 = arith.mulf %417, %415 : vector<2x32xf32>
    %419 = arith.mulf %409, %370 : vector<2x32xf32>
    %420 = arith.addf %418, %419 : vector<2x32xf32>
    %cst_94 = arith.constant dense<0.000000e+00> : vector<2x128xf32>
    %421 = tpu.matmul %420, %8, %cst_94 {dimension_numbers = #tpu.dot_dimension_numbers<[1], [0], [0], [1], [0, 0, 1, 1], [], []>} : vector<2x32xf32>, vector<32x128xf32>, vector<2x128xf32> -> vector<2x128xf32>
    %422 = arith.addf %421, %21 : vector<2x128xf32>
    %c14 = arith.constant 14 : index
    %c0_95 = arith.constant 0 : index
    %423 = vector.load %arg11[%c14, %c0_95] : memref<16x128xf32, #tpu.memory_space<vmem>>, vector<2x128xf32>
    tpu.vector_store %arg11[%c14, %c0_95], %422 {strides = array<i32>} : memref<16x128xf32, #tpu.memory_space<vmem>>, vector<2x128xf32>,
    return
  }
}

</mosaic_0001>

<bundles_post_ra>
// kernel: gru_forward.1
= control target key start
LH: loop header
LB: loop body
LE: loop exit
PB: predicated region body
PF: predicated region fallthrough
CT: control target
= control target key end

     0   :  { %16 = vsyncpa [#allocation3], 0  ;;  %s2538_s0 = inlined_call_operand.hbm [shape: f32[16,16], index: 0, kind: input, shape index: {}]   ;;  %s2539_s1 = inlined_call_operand.hbm [shape: f32[16,96], index: 1, kind: input, shape index: {}]   ;;  %s2540_s2 = inlined_call_operand.hbm [shape: f32[32,96], index: 2, kind: input, shape index: {}]   ;;  %s2541_s3 = inlined_call_operand.vmem [shape: f32[1,96], index: 3, kind: input, shape index: {}]   ;;  %s2542_s4 = inlined_call_operand.vmem [shape: f32[1,32], index: 4, kind: input, shape index: {}]   ;;  %s2543_s5 = inlined_call_operand.hbm [shape: f32[32,96], index: 5, kind: input, shape index: {}]   ;;  %s2544_s6 = inlined_call_operand.hbm [shape: f32[32,96], index: 6, kind: input, shape index: {}]   ;;  %s2545_s7 = inlined_call_operand.vmem [shape: f32[1,96], index: 7, kind: input, shape index: {}]   ;;  %s2546_s8 = inlined_call_operand.vmem [shape: f32[1,32], index: 8, kind: input, shape index: {}]   ;;  %s2547_s9 = inlined_call_operand.hbm [shape: f32[32,128], index: 9, kind: input, shape index: {}]   ;;  %s2548_s10 = inlined_call_operand.hbm [shape: f32[1,128], index: 10, kind: input, shape index: {}]   ;;  %s2549_s11 = inlined_call_operand.hbm [shape: f32[16,128], index: 11, kind: output, shape index: {}]  }
   0x1   :  { %17 = vsyncpa [#allocation6], 0 }
   0x2   :  { %18 = vsyncpa [#allocation9], 0 }
   0x3   :  { %19 = vsyncpa [#allocation12], 0 }
   0x4   :  { %20 = vsyncpa [#allocation4], 0  ;;  %s38_s19 = sshll.u32 %s2539_s1, 4  ;;  %s2039_s20 = smov [#allocation5]   ;;  %s39_s19 = int_to_ptr.hbm [resolvable:$true] %s38_s19 }
   0x5   :  { %s40_s21 = sshll.u32 %s2039_s20, 4  ;;  %s68_s24 = sshll.u32 %s2543_s5, 4  ;;  %s41_s21 = int_to_ptr.vmem [resolvable:$true] %s40_s21  ;;  %s69_s24 = int_to_ptr.hbm [resolvable:$true] %s68_s24 }
   0x6   :  { %s2040_s25 = smov 128   ;;  %s2041_s26 = smov 8  }
   0x7   :  { %46 = dma.hbm_to_vmem [thread:$0]  %s39_s19, 256, %s41_s21, [#allocation6], %s2040_s25, %s2040_s25, %s2041_s26  }
   0x8   :  { %s2042_s27 = smov [#allocation8]   ;;  %s98_s1 = sshll.u32 %s2547_s9, 4  ;;  %s99_s1 = int_to_ptr.hbm [resolvable:$true] %s98_s1 }
   0x9   :  { %s70_s28 = sshll.u32 %s2042_s27, 4  ;;  %s25_s13 = sshll.u32 %s2538_s0, 4  ;;  %s71_s28 = int_to_ptr.vmem [resolvable:$true] %s70_s28  ;;  %s26_s13 = int_to_ptr.hbm [resolvable:$true] %s25_s13 }
   0xa   :  { %76 = dma.hbm_to_vmem [thread:$0]  %s69_s24, 512, %s71_s28, [#allocation9], %s2040_s25, %s2040_s25, %s2041_s26  }
   0xb   :  { %s2043_s14 = smov [#allocation11]   ;;  %s2044_s16 = smov [#allocation2]  }
   0xc   :  { %s100_s15 = sshll.u32 %s2043_s14, 4  ;;  %s27_s9 = sshll.u32 %s2044_s16, 4  ;;  %s101_s15 = int_to_ptr.vmem [resolvable:$true] %s100_s15  ;;  %s28_s9 = int_to_ptr.vmem [resolvable:$true] %s27_s9 }
   0xd   :  { %106 = dma.hbm_to_vmem [thread:$0]  %s99_s1, 512, %s101_s15, [#allocation12], %s2040_s25, %s2040_s25, %s2041_s26  }
   0xe   :  { %s51_s19 = sshll.u32 %s2540_s2, 4  ;;  %s81_s21 = sshll.u32 %s2544_s6, 4  ;;  %s52_s19 = int_to_ptr.hbm [resolvable:$true] %s51_s19  ;;  %s82_s21 = int_to_ptr.hbm [resolvable:$true] %s81_s21 }
   0xf   :  { %33 = dma.hbm_to_vmem [thread:$0]  %s26_s13, 256, %s28_s9, [#allocation3], %s2040_s25, %s2040_s25, %s2041_s26  }
  0x10   :  { %s2045_s22 = smov [#allocation7]   ;;  %s2046_s24 = smov [#allocation10]  }
  0x11   :  { %s53_s23 = sshll.u32 %s2045_s22, 4  ;;  %s83_s2 = sshll.u32 %s2046_s24, 4  ;;  %s54_s23 = int_to_ptr.vmem [resolvable:$true] %s53_s23  ;;  %s84_s2 = int_to_ptr.vmem [resolvable:$true] %s83_s2 }
  0x12   :  { %59 = dma.hbm_to_vmem [thread:$0]  %s52_s19, 512, %s54_s23, [#allocation6], %s2040_s25, %s2040_s25, %s2041_s26  }
  0x13   :  { %s112_s29 = sshll.u32 %s2548_s10, 4  ;;  %s2047_s6 = smov [#allocation13]   ;;  %s113_s29 = int_to_ptr.hbm [resolvable:$true] %s112_s29 }
  0x14   :  { %89 = dma.hbm_to_vmem [thread:$0]  %s82_s21, 512, %s84_s2, [#allocation9], %s2040_s25, %s2040_s25, %s2041_s26  }
  0x15   :  { %s114_s30 = sshll.u32 %s2047_s6, 4  ;;  %s115_s30 = int_to_ptr.vmem [resolvable:$true] %s114_s30 }
  0x16   :  { %117 = dma.hbm_to_vmem [thread:$0]  %s113_s29, 16, %s115_s30, [#allocation12]  }
  0x17   :  { %2029 = dma.done.wait [#allocation3], 256  }
  0x18   :  { %2030 = vsyncadd [#allocation3], 4294967040 }
  0x19   :  { %2031 = dma.done.wait [#allocation6], 768  }
  0x1a   :  { %2032 = vsyncadd [#allocation6], 4294966528 }
  0x1b   :  { %2033 = dma.done.wait [#allocation9], 1024  }
  0x1c   :  { %2034 = vsyncadd [#allocation9], 4294966272 }
  0x1d   :  { %2035 = dma.done.wait [#allocation12], 528  }
  0x1e   :  { %2036 = vsyncadd [#allocation12], 4294966768  ;;  %v2151_v0 = vld [vmem:[#allocation7 + $0x18] sm:$0xff]  ;;  %v2153_v2 = vld [vmem:[#allocation7 + $0x10] sm:$0xff]  ;;  %vm174_vm0 = vcmask 130048   ;;  %s2048_s5 = smov 64  }
  0x1f   :  { %v147_v1 = vld [vmem:[#allocation5 + $0x8] sm:$0xff]  ;;  %230 = vmatpush.msra.mxu1 %v2151_v0  ;;  %v146_v3 = vld [vmem:[#allocation5] sm:$0xff]  ;;  %v169_v4 = vld [vmem:[#allocation2] sm:$0xff]  ;;  %v2049_v8 = vmov 0.0   ;;  %vm214_vm5 = vcmask 261120   ;;  %s1641_s0 = sshll.u32 %s2549_s11, 4  ;;  %s1642_s0 = int_to_ptr.hbm [resolvable:$true] %s1641_s0 }
  0x20   :  { %195 = vmatpush.msra.mxu0 %v147_v1  ;;  %v2156_v5 = vld [vmem:[#allocation7 + $0x8] sm:$0xff]  ;;  %v1718_v6 = vld [vmem:[%s2542_s4] ss:$0 sm:$0xff]  ;;  %v2185_v34 = vld [vmem:[#allocation8 + $0x18] sm:$0xff] }
  0x21   :  { %231 = vmatpush.msra.mxu1 %v2153_v2  ;;  %v2163_v7 = vld [vmem:[#allocation7] sm:$0xff]  ;;  %258 = vrot.lane.b32.xlu0 %v1718_v6, %s2048_s5  ;;  %v2187_v35 = vld [vmem:[#allocation8 + $0x10] sm:$0xff]  ;;  %v2189_v36 = vld [vmem:[#allocation10 + $0x18] sm:$0xff] }
  0x22   :  { %196 = vmatpush.msra.mxu0 %v146_v3  ;;  %v2176_v12 = vld [vmem:[%s2541_s3] ss:$0 sm:$0xff]  ;;  %s2050_s3 = smov 96   ;;  %298 = vmatpush.msra.mxu2 %v2185_v34  ;;  %v2193_v37 = vld [vmem:[#allocation10 + $0x10] sm:$0xff]  ;;  %v2195_v38 = vld [vmem:[#allocation8 + $0x8] sm:$0xff] }
  0x23   :  { %1657 = vmatmul.msk.f32.vlgmr.msra.gmra.mxu0 %vm174_vm0, %v169_v4  ;;  %232 = vmatpush.msra.mxu1 %v2156_v5  ;;  %v2197_v39 = vld [vmem:[#allocation10 + $0x8] sm:$0xff]  ;;  %v2202_v40 = vld [vmem:[#allocation8] sm:$0xff] }
  0x24   :  { %318 = vmatpush.msra.mxu3 %v2189_v36  ;;  %499 = vmatpush.msrb.mxu0 %v2189_v36  ;;  %v2217_v46 = vld [vmem:[#allocation10] sm:$0xff] }
  0x25   :  { %233 = vmatpush.msra.mxu1 %v2163_v7  ;;  %299 = vmatpush.msra.mxu2 %v2187_v35  ;;  %v1720_v47 = vld [vmem:[%s2546_s8] ss:$0 sm:$0xff] }
  0x26   :  { %234 = vmatmul.f32.vlgmr.msra.gmra.mxu1 %v2049_v8  ;;  %319 = vmatpush.msra.mxu3 %v2193_v37 }
  0x27   :  { %500 = vmatpush.msrb.mxu0 %v2193_v37  ;;  %300 = vmatpush.msra.mxu2 %v2195_v38 }
  0x28   :  { %320 = vmatpush.msra.mxu3 %v2197_v39 }
  0x29   :  { %501 = vmatpush.msrb.mxu0 %v2197_v39  ;;  %301 = vmatpush.msra.mxu2 %v2202_v40 }
  0x2a   :  { %321 = vmatpush.msra.mxu3 %v2217_v46 }
  0x2b   :  { %407 = vmatpush.msrb.mxu2 %v2151_v0  ;;  %502 = vmatpush.msrb.mxu0 %v2217_v46 }
  0x2c   :  { %322 = vmatmul.f32.vlgmr.msra.gmra.mxu3 %v2049_v8 }
  0x2d   :  { %408 = vmatpush.msrb.mxu2 %v2153_v2  ;;  %677 = vmatpush.msra.mxu0 %v2189_v36 }
  0x2e   :  { %479 = vmatpush.msrb.mxu3 %v2185_v34 }
  0x2f   :  { %409 = vmatpush.msrb.mxu2 %v2156_v5  ;;  %678 = vmatpush.msra.mxu0 %v2193_v37 }
  0x30   :  { %480 = vmatpush.msrb.mxu3 %v2187_v35 }
  0x31   :  { %410 = vmatpush.msrb.mxu2 %v2163_v7  ;;  %679 = vmatpush.msra.mxu0 %v2197_v39 }
  0x32   :  { %481 = vmatpush.msrb.mxu3 %v2195_v38 }
  0x33   :  { %680 = vmatpush.msra.mxu0 %v2217_v46 }
  0x34   :  { %482 = vmatpush.msrb.mxu3 %v2202_v40 }
  0x36   :  { %657 = vmatpush.msra.mxu3 %v2185_v34 }
  0x38   :  { %658 = vmatpush.msra.mxu3 %v2187_v35 }
  0x3a   :  { %659 = vmatpush.msra.mxu3 %v2195_v38 }
  0x3c   :  { %660 = vmatpush.msra.mxu3 %v2202_v40 }
  0x93   :  { %v2169_v9 = vpop.permute.xlu0 %258 }
  0xa0   :  { %v198_v13 = vpop.f32.mrf.mxu0 }
  0xa1   :  { %v2179_v14 = vadd.f32 %v2176_v12, %v198_v13 }
  0xa3   :  { %v235_v10 = vpop.f32.mrf.mxu1 }
  0xa4   :  { %v261_v11 = vadd.f32 %v2169_v9, %v235_v10  ;;  %v238_v15 = vadd.f32 %v235_v10, %v2179_v14 }
  0xa6   :  { %263 = vrot.lane.b32.xlu0 %v261_v11, %s2048_s5  ;;  %v1659_v16 = vmul.f32 -1.442695, %v238_v15 }
  0xa8   :  { %1723 = vpow2.f32 %v1659_v16  ;;  %v2259_v16 = vld [vmem:[%s2545_s7] ss:$0 sm:$0xff] }
  0xae   :  { %v1724_v17 = vpop.eup %1723  ;;  %346 = vrot.lane.b32.xlu0 %v1720_v47, %s2048_s5 }
  0xaf   :  { %v242_v18 = vadd.f32 1.0, %v1724_v17  ;;  %v323_v57 = vpop.f32.mrf.mxu3 }
  0xb1   :  { %1725 = vrcp.f32 %v242_v18  ;;  %v254_v24 = vand.u32 2147483648, %v242_v18  ;;  %vm248_vm2 = vweird.f32 %v242_v18  ;;  %v252_v25 = vand.u32 2147483647, %v242_v18 }
  0xb3   :  { %v255_v27 = vor.u32 1.1754944e-38, %v254_v24  ;;  %vm253_vm4 = vcmp.eq.f32.partialorder %v252_v25, 8.507059e+37 }
  0xb7   :  { %v1726_v19 = vpop.eup %1725 }
  0xb8   :  { %v244_v20 = vmul.f32 %v1726_v19, %v242_v18  ;;  %vm249_vm1 = vweird.f32 %v1726_v19 }
  0xb9   :  { %vm250_vm3 = vmor %vm248_vm2, %vm249_vm1 }
  0xba   :  { %v245_v21 = vsub.f32 1.0, %v244_v20 }
  0xbc   :  { %v246_v22 = vmul.f32 %v1726_v19, %v245_v21 }
  0xbe   :  { %v247_v23 = vadd.f32 %v1726_v19, %v246_v22 }
  0xc0   :  { %v251_v26 = vsel %vm250_vm3, %v1726_v19, %v247_v23 }
  0xc1   :  { %v256_v29 = vsel %vm253_vm4, %v255_v27, %v251_v26 }
  0xc2   :  { %v273_v41 = vsub.f32 1.0, %v256_v29  ;;  %v279_v44 = vmul.f32 0.0, %v256_v29 }
 0x118   :  { %v264_v28 = vpop.permute.xlu0 %263 }
 0x119   :  { %v266_v30 = vmul.f32 %v264_v28, %v256_v29 }
 0x11b   :  { %268 = vrot.lane.b32.xlu1 %v266_v30, %s2048_s5 }
 0x120   :  { %v2251_v56 = vpop.permute.xlu0 %346 }
 0x121   :  { %v349_v58 = vadd.f32 %v2251_v56, %v323_v57 }
 0x18d   :  { %v269_v31 = vpop.permute.xlu1 %268 }
 0x18e   :  { %v271_v32 = vadd.f32 %v269_v31, %v2179_v14 }
 0x190   :  { %1727 = vtanh.f32 %v271_v32 }
 0x196   :  { %v1728_v33 = vpop.eup %1727 }
 0x197   :  { %275 = vrot.lane.b32.xlu1 %v1728_v33, %s2050_s3 }
 0x209   :  { %v276_v42 = vpop.permute.xlu1 %275 }
 0x20a   :  { %v278_v43 = vmul.f32 %v276_v42, %v273_v41 }
 0x20c   :  { %v2213_v45 = vadd.f32 %v279_v44, %v278_v43 }
 0x20e   :  { %282 = vrot.lane.b32.xlu2 %v2213_v45, %s2050_s3  ;;  %v457_v10 = vrot.slane %v2213_v45, 6 }
 0x268   :  { %v283_v48 = vpop.permute.xlu2 %282 }
 0x269   :  { %1660 = vmatmul.msk.f32.vlgmr.msra.gmra.mxu2 %vm214_vm5, %v283_v48 }
 0x26a   :  { %585 = vmatpush.msra.mxu2 %v2151_v0 }
 0x26c   :  { %586 = vmatpush.msra.mxu2 %v2153_v2 }
 0x26e   :  { %587 = vmatpush.msra.mxu2 %v2156_v5 }
 0x270   :  { %588 = vmatpush.msra.mxu2 %v2163_v7 }
 0x271   :  { %1663 = vmatmul.msk.f32.vlgmr.msrb.gmra.mxu2 %vm214_vm5, %v283_v48 }
 0x272   :  { %763 = vmatpush.msrb.mxu2 %v2151_v0 }
 0x274   :  { %764 = vmatpush.msrb.mxu2 %v2153_v2 }
 0x276   :  { %765 = vmatpush.msrb.mxu2 %v2156_v5 }
 0x278   :  { %766 = vmatpush.msrb.mxu2 %v2163_v7 }
 0x2ec   :  { %v303_v49 = vpop.f32.mrf.mxu2 }
 0x2ed   :  { %v304_v17 = vadd.f32 %v2259_v16, %v303_v49 }
 0x2ef   :  { %v326_v18 = vadd.f32 %v323_v57, %v304_v17 }
 0x2f1   :  { %v1661_v19 = vmul.f32 -1.442695, %v326_v18 }
 0x2f4   :  { %v412_v50 = vpop.f32.mrf.mxu2 }
 0x2f5   :  { %v416_v51 = vrot.slane %v412_v50, 6  ;;  %v438_v52 = vadd.f32 %v412_v50, %v2169_v9 }
 0x2f7   :  { %v418_v53 = vadd.f32 %v416_v51, %v2179_v14  ;;  %v440_v54 = vrot.slane %v438_v52, 6 }
 0x2f9   :  { %v1664_v55 = vmul.f32 -1.442695, %v418_v53  ;;  %441 = vrot.lane.b32.xlu2 %v440_v54, %s2048_s5 }
 0x2fb   :  { %1729 = vpow2.f32 %v1664_v55 }
 0x301   :  { %v1730_v59 = vpop.eup %1729  ;;  %351 = vrot.lane.b32.xlu2 %v349_v58, %s2048_s5 }
 0x302   :  { %v422_v60 = vadd.f32 1.0, %v1730_v59 }
 0x304   :  { %1731 = vrcp.f32 %v422_v60  ;;  %v434_v1 = vand.u32 2147483648, %v422_v60  ;;  %v432_v4 = vand.u32 2147483647, %v422_v60  ;;  %vm428_vm7 = vweird.f32 %v422_v60 }
 0x305   :  { %1733 = vpow2.f32 %v1661_v19 }
 0x306   :  { %v435_v8 = vor.u32 1.1754944e-38, %v434_v1  ;;  %vm433_vm9 = vcmp.eq.f32.partialorder %v432_v4, 8.507059e+37  ;;  %v2281_v1 = vld [vmem:[#allocation11 + $0x8] sm:$0xff] }
 0x30a   :  { %v1732_v61 = vpop.eup %1731 }
 0x30b   :  { %v424_v62 = vmul.f32 %v1732_v61, %v422_v60  ;;  %vm429_vm6 = vweird.f32 %v1732_v61  ;;  %v1734_v20 = vpop.eup %1733 }
 0x30c   :  { %vm430_vm8 = vmor %vm428_vm7, %vm429_vm6  ;;  %v330_v21 = vadd.f32 1.0, %v1734_v20 }
 0x30d   :  { %v425_v63 = vsub.f32 1.0, %v424_v62  ;;  %v2275_v62 = vld [vmem:[#allocation11 + $0x18] sm:$0xff] }
 0x30e   :  { %1735 = vrcp.f32 %v330_v21  ;;  %v342_v29 = vand.u32 2147483648, %v330_v21  ;;  %vm336_vm11 = vweird.f32 %v330_v21  ;;  %v340_v30 = vand.u32 2147483647, %v330_v21  ;;  %386 = vmatpush.msrb.mxu1 %v2275_v62 }
 0x30f   :  { %v426_v3 = vmul.f32 %v1732_v61, %v425_v63  ;;  %v2277_v63 = vld [vmem:[#allocation11 + $0x10] sm:$0xff] }
 0x310   :  { %v343_v32 = vor.u32 1.1754944e-38, %v342_v29  ;;  %vm341_vm13 = vcmp.eq.f32.partialorder %v340_v30, 8.507059e+37  ;;  %387 = vmatpush.msrb.mxu1 %v2277_v63 }
 0x311   :  { %v427_v6 = vadd.f32 %v1732_v61, %v426_v3  ;;  %v2284_v3 = vld [vmem:[#allocation11] sm:$0xff] }
 0x312   :  { %388 = vmatpush.msrb.mxu1 %v2281_v1 }
 0x313   :  { %v431_v11 = vsel %vm430_vm8, %v1732_v61, %v427_v6  ;;  %v170_v61 = vld [vmem:[#allocation2 + $0x8] sm:$0xff] }
 0x314   :  { %v436_v13 = vsel %vm433_vm9, %v435_v8, %v431_v11  ;;  %v1736_v22 = vpop.eup %1735  ;;  %1658 = vmatmul.msk.f32.gmra.mxu0 %vm174_vm0, %v170_v61  ;;  %389 = vmatpush.msrb.mxu1 %v2284_v3 }
 0x315   :  { %v459_v15 = vmul.f32 %v457_v10, %v436_v13  ;;  %v332_v23 = vmul.f32 %v1736_v22, %v330_v21  ;;  %vm337_vm10 = vweird.f32 %v1736_v22  ;;  %v451_v50 = vsub.f32 1.0, %v436_v13  ;;  %v2317_v21 = vld [vmem:[#allocation13] ss:$0 sm:$0xff] }
 0x316   :  { %vm338_vm12 = vmor %vm336_vm11, %vm337_vm10  ;;  %564 = vmatpush.msra.mxu1 %v2275_v62 }
 0x317   :  { %v333_v24 = vsub.f32 1.0, %v332_v23 }
 0x318   :  { %565 = vmatpush.msra.mxu1 %v2277_v63 }
 0x319   :  { %v334_v25 = vmul.f32 %v1736_v22, %v333_v24 }
 0x31a   :  { %566 = vmatpush.msra.mxu1 %v2281_v1 }
 0x31b   :  { %v335_v28 = vadd.f32 %v1736_v22, %v334_v25 }
 0x31c   :  { %567 = vmatpush.msra.mxu1 %v2284_v3 }
 0x31d   :  { %v339_v31 = vsel %vm338_vm12, %v1736_v22, %v335_v28 }
 0x31e   :  { %v344_v41 = vsel %vm341_vm13, %v343_v32, %v339_v31 }
 0x31f   :  { %v361_v55 = vsub.f32 1.0, %v344_v41  ;;  %v367_v58 = vmul.f32 0.0, %v344_v41 }
 0x353   :  { %v442_v26 = vpop.permute.xlu2 %441 }
 0x354   :  { %v444_v27 = vmul.f32 %v442_v26, %v436_v13 }
 0x356   :  { %446 = vrot.lane.b32.xlu1 %v444_v27, %s2048_s5 }
 0x35b   :  { %v352_v33 = vpop.permute.xlu2 %351 }
 0x35c   :  { %v354_v42 = vmul.f32 %v352_v33, %v344_v41 }
 0x35e   :  { %356 = vrot.lane.b32.xlu1 %v354_v42, %s2048_s5 }
 0x391   :  { %v2315_v20 = vpop.f32.mrf.mxu0 }
 0x3c8   :  { %v447_v43 = vpop.permute.xlu1 %446 }
 0x3c9   :  { %v449_v44 = vadd.f32 %v447_v43, %v2179_v14 }
 0x3cb   :  { %1737 = vtanh.f32 %v449_v44 }
 0x3d0   :  { %v357_v45 = vpop.permute.xlu1 %356 }
 0x3d1   :  { %v1738_v47 = vpop.eup %1737  ;;  %v359_v48 = vadd.f32 %v357_v45, %v304_v17 }
 0x3d2   :  { %453 = vrot.lane.b32.xlu0 %v1738_v47, %s2050_s3 }
 0x3d3   :  { %1739 = vtanh.f32 %v359_v48 }
 0x3d9   :  { %v1740_v49 = vpop.eup %1739 }
 0x3da   :  { %363 = vrot.lane.b32.xlu0 %v1740_v49, %s2050_s3 }
 0x444   :  { %v454_v51 = vpop.permute.xlu0 %453 }
 0x445   :  { %v456_v52 = vmul.f32 %v454_v51, %v451_v50 }
 0x447   :  { %v2267_v53 = vadd.f32 %v459_v15, %v456_v52 }
 0x449   :  { %v462_v54 = vrot.slane %v2267_v53, 2  ;;  %v635_v41 = vrot.slane %v2267_v53, 6 }
 0x44b   :  { %463 = vrot.lane.b32.xlu2 %v462_v54, %s2050_s3 }
 0x44c   :  { %v364_v57 = vpop.permute.xlu0 %363 }
 0x44d   :  { %v366_v59 = vmul.f32 %v364_v57, %v361_v55 }
 0x44f   :  { %v2271_v60 = vadd.f32 %v367_v58, %v366_v59 }
 0x451   :  { %370 = vrot.lane.b32.xlu1 %v2271_v60, %s2050_s3 }
 0x4a5   :  { %v464_v4 = vpop.permute.xlu2 %463 }
 0x4a6   :  { %1665 = vmatmul.msk.f32.vlgmr.msrb.gmra.mxu3 %vm214_vm5, %v464_v4  ;;  %1669 = vmatmul.msk.f32.vlgmr.msra.gmra.mxu2 %vm214_vm5, %v464_v4 }
 0x4a7   :  { %835 = vmatpush.msrb.mxu3 %v2185_v34  ;;  %941 = vmatpush.msra.mxu2 %v2151_v0 }
 0x4a9   :  { %836 = vmatpush.msrb.mxu3 %v2187_v35  ;;  %942 = vmatpush.msra.mxu2 %v2153_v2 }
 0x4ab   :  { %837 = vmatpush.msrb.mxu3 %v2195_v38  ;;  %943 = vmatpush.msra.mxu2 %v2156_v5 }
 0x4ad   :  { %838 = vmatpush.msrb.mxu3 %v2202_v40  ;;  %944 = vmatpush.msra.mxu2 %v2163_v7 }
 0x4c3   :  { %v371_v6 = vpop.permute.xlu1 %370 }
 0x4c4   :  { %1662 = vmatmul.msk.f32.vlgmr.msrb.gmra.mxu1 %vm214_vm5, %v371_v6  ;;  %1666 = vmatmul.msk.f32.vlgmr.msrb.gmra.mxu0 %vm214_vm5, %v371_v6 }
 0x4c5   :  { %855 = vmatpush.msrb.mxu0 %v2189_v36  ;;  %742 = vmatpush.msrb.mxu1 %v2275_v62 }
 0x4c7   :  { %856 = vmatpush.msrb.mxu0 %v2193_v37  ;;  %743 = vmatpush.msrb.mxu1 %v2277_v63 }
 0x4c9   :  { %857 = vmatpush.msrb.mxu0 %v2197_v39  ;;  %744 = vmatpush.msrb.mxu1 %v2281_v1 }
 0x4cb   :  { %858 = vmatpush.msrb.mxu0 %v2217_v46  ;;  %745 = vmatpush.msrb.mxu1 %v2284_v3 }
 0x529   :  { %v590_v8 = vpop.f32.mrf.mxu2  ;;  %v484_v45 = vpop.f32.mrf.mxu3 }
 0x52a   :  { %v594_v10 = vrot.slane %v590_v8, 4  ;;  %v616_v11 = vadd.f32 %v590_v8, %v2169_v9  ;;  %v485_v47 = vadd.f32 %v2259_v16, %v484_v45 }
 0x52c   :  { %v596_v13 = vadd.f32 %v594_v10, %v2179_v14  ;;  %v618_v15 = vrot.slane %v616_v11, 4 }
 0x52e   :  { %v1670_v17 = vmul.f32 -1.442695, %v596_v13  ;;  %619 = vrot.lane.b32.xlu2 %v618_v15, %s2048_s5 }
 0x530   :  { %1741 = vpow2.f32 %v1670_v17 }
 0x536   :  { %v1742_v18 = vpop.eup %1741 }
 0x537   :  { %v600_v19 = vadd.f32 1.0, %v1742_v18 }
 0x539   :  { %1743 = vrcp.f32 %v600_v19  ;;  %v612_v29 = vand.u32 2147483648, %v600_v19  ;;  %v610_v31 = vand.u32 2147483647, %v600_v19  ;;  %vm606_vm15 = vweird.f32 %v600_v19 }
 0x53b   :  { %v613_v33 = vor.u32 1.1754944e-38, %v612_v29  ;;  %vm611_vm1 = vcmp.eq.f32.partialorder %v610_v31, 8.507059e+37 }
 0x53f   :  { %v1744_v22 = vpop.eup %1743 }
 0x540   :  { %v602_v23 = vmul.f32 %v1744_v22, %v600_v19  ;;  %vm607_vm14 = vweird.f32 %v1744_v22 }
 0x541   :  { %v391_v24 = vpop.f32.mrf.mxu1  ;;  %v504_v25 = vpop.f32.mrf.mxu0  ;;  %vm608_vm0 = vmor %vm606_vm15, %vm607_vm14 }
 0x542   :  { %v392_v26 = vadd.f32 %v2317_v21, %v391_v24  ;;  %v527_v27 = vadd.f32 %v504_v25, %v2251_v56  ;;  %v603_v28 = vsub.f32 1.0, %v602_v23  ;;  %v507_v48 = vadd.f32 %v504_v25, %v485_v47 }
 0x544   :  { %394 = vst [vmem:[#allocation14] sm:$0x3] %v392_v26  ;;  %529 = vrot.lane.b32.xlu1 %v527_v27, %s2048_s5  ;;  %v604_v30 = vmul.f32 %v1744_v22, %v603_v28  ;;  %v1667_v50 = vmul.f32 -1.442695, %v507_v48 }
 0x546   :  { %v605_v32 = vadd.f32 %v1744_v22, %v604_v30  ;;  %1745 = vpow2.f32 %v1667_v50 }
 0x548   :  { %v609_v42 = vsel %vm608_vm0, %v1744_v22, %v605_v32 }
 0x549   :  { %v614_v43 = vsel %vm611_vm1, %v613_v33, %v609_v42 }
 0x54a   :  { %v637_v44 = vmul.f32 %v635_v41, %v614_v43  ;;  %v629_v24 = vsub.f32 1.0, %v614_v43 }
 0x54c   :  { %v1746_v52 = vpop.eup %1745 }
 0x54d   :  { %v511_v54 = vadd.f32 1.0, %v1746_v52 }
 0x54f   :  { %1747 = vrcp.f32 %v511_v54  ;;  %v523_v61 = vand.u32 2147483648, %v511_v54  ;;  %vm517_vm3 = vweird.f32 %v511_v54  ;;  %v521_v4 = vand.u32 2147483647, %v511_v54 }
 0x551   :  { %v524_v8 = vor.u32 1.1754944e-38, %v523_v61  ;;  %vm522_vm6 = vcmp.eq.f32.partialorder %v521_v4, 8.507059e+37 }
 0x555   :  { %v1748_v55 = vpop.eup %1747 }
 0x556   :  { %v513_v57 = vmul.f32 %v1748_v55, %v511_v54  ;;  %vm518_vm2 = vweird.f32 %v1748_v55 }
 0x557   :  { %vm519_vm4 = vmor %vm517_vm3, %vm518_vm2 }
 0x558   :  { %v514_v53 = vsub.f32 1.0, %v513_v57 }
 0x55a   :  { %v515_v58 = vmul.f32 %v1748_v55, %v514_v53 }
 0x55c   :  { %v516_v59 = vadd.f32 %v1748_v55, %v515_v58 }
 0x55e   :  { %v520_v6 = vsel %vm519_vm4, %v1748_v55, %v516_v59 }
 0x55f   :  { %v525_v11 = vsel %vm522_vm6, %v524_v8, %v520_v6 }
 0x560   :  { %v539_v29 = vsub.f32 1.0, %v525_v11  ;;  %v545_v31 = vmul.f32 %v525_v11, %v2271_v60 }
 0x588   :  { %v620_v49 = vpop.permute.xlu2 %619 }
 0x589   :  { %v622_v51 = vmul.f32 %v620_v49, %v614_v43 }
 0x58b   :  { %624 = vrot.lane.b32.xlu0 %v622_v51, %s2048_s5 }
 0x5b6   :  { %v530_v10 = vpop.permute.xlu1 %529 }
 0x5b7   :  { %v532_v13 = vmul.f32 %v530_v10, %v525_v11 }
 0x5b9   :  { %534 = vrot.lane.b32.xlu2 %v532_v13, %s2048_s5 }
 0x5fd   :  { %v625_v15 = vpop.permute.xlu0 %624 }
 0x5fe   :  { %v627_v17 = vadd.f32 %v625_v15, %v2179_v14 }
 0x600   :  { %1749 = vtanh.f32 %v627_v17 }
 0x606   :  { %v1750_v18 = vpop.eup %1749 }
 0x607   :  { %631 = vrot.lane.b32.xlu0 %v1750_v18, %s2050_s3 }
 0x613   :  { %v535_v19 = vpop.permute.xlu2 %534 }
 0x614   :  { %v537_v22 = vadd.f32 %v535_v19, %v485_v47 }
 0x616   :  { %1751 = vtanh.f32 %v537_v22 }
 0x61c   :  { %v1752_v23 = vpop.eup %1751 }
 0x61d   :  { %541 = vrot.lane.b32.xlu1 %v1752_v23, %s2050_s3 }
 0x679   :  { %v632_v25 = vpop.permute.xlu0 %631 }
 0x67a   :  { %v634_v26 = vmul.f32 %v632_v25, %v629_v24 }
 0x67c   :  { %v2329_v27 = vadd.f32 %v637_v44, %v634_v26 }
 0x67e   :  { %v640_v28 = vrot.slane %v2329_v27, 4 }
 0x680   :  { %641 = vrot.lane.b32.xlu2 %v640_v28, %s2050_s3 }
 0x68f   :  { %v542_v30 = vpop.permute.xlu1 %541 }
 0x690   :  { %v544_v32 = vmul.f32 %v542_v30, %v539_v29 }
 0x692   :  { %v2334_v33 = vadd.f32 %v545_v31, %v544_v32 }
 0x694   :  { %548 = vrot.lane.b32.xlu0 %v2334_v33, %s2050_s3 }
 0x6da   :  { %v642_v41 = vpop.permute.xlu2 %641 }
 0x6db   :  { %1671 = vmatmul.msk.f32.vlgmr.msra.gmra.mxu3 %vm214_vm5, %v642_v41  ;;  %1675 = vmatmul.msk.f32.vlgmr.msrb.gmra.mxu2 %vm214_vm5, %v642_v41 }
 0x6dc   :  { %1007 = vmatpush.msra.mxu3 %v2185_v34  ;;  %1113 = vmatpush.msrb.mxu2 %v2151_v0 }
 0x6de   :  { %1008 = vmatpush.msra.mxu3 %v2187_v35  ;;  %1114 = vmatpush.msrb.mxu2 %v2153_v2 }
 0x6e0   :  { %1009 = vmatpush.msra.mxu3 %v2195_v38  ;;  %1115 = vmatpush.msrb.mxu2 %v2156_v5 }
 0x6e2   :  { %1010 = vmatpush.msra.mxu3 %v2202_v40  ;;  %1116 = vmatpush.msrb.mxu2 %v2163_v7 }
 0x706   :  { %v549_v60 = vpop.permute.xlu0 %548 }
 0x707   :  { %1668 = vmatmul.msk.f32.vlgmr.msra.gmra.mxu1 %vm214_vm5, %v549_v60  ;;  %1672 = vmatmul.msk.f32.vlgmr.msra.gmra.mxu0 %vm214_vm5, %v549_v60 }
 0x708   :  { %1027 = vmatpush.msra.mxu0 %v2189_v36  ;;  %920 = vmatpush.msra.mxu1 %v2275_v62 }
 0x70a   :  { %1028 = vmatpush.msra.mxu0 %v2193_v37  ;;  %921 = vmatpush.msra.mxu1 %v2277_v63 }
 0x70c   :  { %1029 = vmatpush.msra.mxu0 %v2197_v39  ;;  %922 = vmatpush.msra.mxu1 %v2281_v1 }
 0x70e   :  { %1030 = vmatpush.msra.mxu0 %v2217_v46  ;;  %923 = vmatpush.msra.mxu1 %v2284_v3 }
 0x75e   :  { %v768_v42 = vpop.f32.mrf.mxu2  ;;  %v662_v54 = vpop.f32.mrf.mxu3 }
 0x75f   :  { %v794_v43 = vadd.f32 %v768_v42, %v2169_v9  ;;  %v772_v50 = vrot.slane %v768_v42, 2  ;;  %v663_v55 = vadd.f32 %v2259_v16, %v662_v54 }
 0x761   :  { %v796_v44 = vrot.slane %v794_v43, 2  ;;  %v774_v51 = vadd.f32 %v772_v50, %v2179_v14 }
 0x763   :  { %797 = vrot.lane.b32.xlu1 %v796_v44, %s2048_s5  ;;  %v1676_v52 = vmul.f32 -1.442695, %v774_v51 }
 0x765   :  { %1753 = vpow2.f32 %v1676_v52  ;;  %v813_v52 = vrot.slane %v2329_v27, 6 }
 0x76b   :  { %v1754_v53 = vpop.eup %1753 }
 0x76c   :  { %v778_v59 = vadd.f32 1.0, %v1754_v53 }
 0x76e   :  { %v790_v18 = vand.u32 2147483648, %v778_v59  ;;  %vm784_vm8 = vweird.f32 %v778_v59  ;;  %v788_v19 = vand.u32 2147483647, %v778_v59 }
 0x770   :  { %v791_v24 = vor.u32 1.1754944e-38, %v790_v18  ;;  %vm789_vm10 = vcmp.eq.f32.partialorder %v788_v19, 8.507059e+37 }
 0x784   :  { %v569_v45 = vpop.f32.mrf.mxu1  ;;  %v682_v47 = vpop.f32.mrf.mxu0 }
 0x785   :  { %v570_v48 = vadd.f32 %v2317_v21, %v569_v45  ;;  %v705_v49 = vadd.f32 %v682_v47, %v2251_v56  ;;  %v685_v57 = vadd.f32 %v682_v47, %v663_v55 }
 0x787   :  { %572 = vst [vmem:[#allocation14 + $0x2] sm:$0x3] %v570_v48  ;;  %707 = vrot.lane.b32.xlu2 %v705_v49, %s2048_s5  ;;  %v1673_v58 = vmul.f32 -1.442695, %v685_v57 }
 0x789   :  { %1755 = vpow2.f32 %v1673_v58 }
 0x78a   :  { %1757 = vrcp.f32 %v778_v59 }
 0x78f   :  { %v1756_v61 = vpop.eup %1755 }
 0x790   :  { %v1758_v4 = vpop.eup %1757  ;;  %v689_v6 = vadd.f32 1.0, %v1756_v61 }
 0x791   :  { %v780_v8 = vmul.f32 %v1758_v4, %v778_v59  ;;  %vm785_vm7 = vweird.f32 %v1758_v4 }
 0x792   :  { %1759 = vrcp.f32 %v689_v6  ;;  %vm786_vm9 = vmor %vm784_vm8, %vm785_vm7  ;;  %v701_v31 = vand.u32 2147483648, %v689_v6  ;;  %vm695_vm12 = vweird.f32 %v689_v6  ;;  %v699_v32 = vand.u32 2147483647, %v689_v6 }
 0x793   :  { %v781_v10 = vsub.f32 1.0, %v780_v8 }
 0x794   :  { %v702_v60 = vor.u32 1.1754944e-38, %v701_v31  ;;  %vm700_vm14 = vcmp.eq.f32.partialorder %v699_v32, 8.507059e+37 }
 0x795   :  { %v782_v11 = vmul.f32 %v1758_v4, %v781_v10 }
 0x797   :  { %v783_v15 = vadd.f32 %v1758_v4, %v782_v11 }
 0x798   :  { %v1760_v13 = vpop.eup %1759 }
 0x799   :  { %v691_v17 = vmul.f32 %v1760_v13, %v689_v6  ;;  %v787_v22 = vsel %vm786_vm9, %v1758_v4, %v783_v15  ;;  %vm696_vm11 = vweird.f32 %v1760_v13 }
 0x79a   :  { %v792_v26 = vsel %vm789_vm10, %v791_v24, %v787_v22  ;;  %vm697_vm13 = vmor %vm695_vm12, %vm696_vm11 }
 0x79b   :  { %v692_v23 = vsub.f32 1.0, %v691_v17  ;;  %v807_v54 = vsub.f32 1.0, %v792_v26  ;;  %v815_v53 = vmul.f32 %v813_v52, %v792_v26 }
 0x79d   :  { %v693_v29 = vmul.f32 %v1760_v13, %v692_v23 }
 0x79f   :  { %v694_v30 = vadd.f32 %v1760_v13, %v693_v29 }
 0x7a1   :  { %v698_v41 = vsel %vm697_vm13, %v1760_v13, %v694_v30  ;;  %v2409_v13 = vadd.f32 %v2176_v12, %v2315_v20 }
 0x7a2   :  { %v703_v42 = vsel %vm700_vm14, %v702_v60, %v698_v41 }
 0x7a3   :  { %v717_v61 = vsub.f32 1.0, %v703_v42  ;;  %v723_v4 = vmul.f32 %v703_v42, %v2334_v33 }
 0x7d5   :  { %v798_v25 = vpop.permute.xlu1 %797 }
 0x7d6   :  { %v800_v28 = vmul.f32 %v798_v25, %v792_v26 }
 0x7d8   :  { %802 = vrot.lane.b32.xlu0 %v800_v28, %s2048_s5 }
 0x7e1   :  { %v708_v43 = vpop.permute.xlu2 %707 }
 0x7e2   :  { %v710_v44 = vmul.f32 %v708_v43, %v703_v42 }
 0x7e4   :  { %712 = vrot.lane.b32.xlu1 %v710_v44, %s2048_s5 }
 0x84a   :  { %v803_v45 = vpop.permute.xlu0 %802 }
 0x84b   :  { %v805_v47 = vadd.f32 %v803_v45, %v2179_v14 }
 0x84d   :  { %1761 = vtanh.f32 %v805_v47 }
 0x853   :  { %v1762_v48 = vpop.eup %1761 }
 0x854   :  { %809 = vrot.lane.b32.xlu2 %v1762_v48, %s2050_s3 }
 0x856   :  { %v713_v49 = vpop.permute.xlu1 %712 }
 0x857   :  { %v715_v50 = vadd.f32 %v713_v49, %v663_v55 }
 0x859   :  { %1763 = vtanh.f32 %v715_v50 }
 0x85f   :  { %v1764_v51 = vpop.eup %1763 }
 0x860   :  { %719 = vrot.lane.b32.xlu0 %v1764_v51, %s2050_s3 }
 0x8ae   :  { %v810_v57 = vpop.permute.xlu2 %809 }
 0x8af   :  { %v812_v58 = vmul.f32 %v810_v57, %v807_v54 }
 0x8b1   :  { %v2371_v59 = vadd.f32 %v815_v53, %v812_v58 }
 0x8b3   :  { %v818_v14 = vrot.slane %v2371_v59, 6  ;;  %v1819_v59 = vld [vmem:[#allocation7 + $0x18] sm:$0xff] }
 0x8b5   :  { %819 = vrot.lane.b32.xlu1 %v818_v14, %s2050_s3 }
 0x8d2   :  { %v720_v55 = vpop.permute.xlu0 %719 }
 0x8d3   :  { %v722_v6 = vmul.f32 %v720_v55, %v717_v61 }
 0x8d5   :  { %v2378_v8 = vadd.f32 %v723_v4, %v722_v6 }
 0x8d7   :  { %726 = vrot.lane.b32.xlu2 %v2378_v8, %s2050_s3 }
 0x927   :  { %v820_v27 = vpop.permute.xlu1 %819 }
 0x928   :  { %1677 = vmatmul.msk.f32.vlgmr.msrb.gmra.mxu3 %vm214_vm5, %v820_v27  ;;  %1681 = vmatmul.msk.f32.vlgmr.msra.gmra.mxu2 %vm214_vm5, %v820_v27 }
 0x929   :  { %1185 = vmatpush.msrb.mxu3 %v2185_v34  ;;  %1291 = vmatpush.msra.mxu2 %v2151_v0 }
 0x92b   :  { %1186 = vmatpush.msrb.mxu3 %v2187_v35  ;;  %1292 = vmatpush.msra.mxu2 %v2153_v2 }
 0x92d   :  { %1187 = vmatpush.msrb.mxu3 %v2195_v38  ;;  %1293 = vmatpush.msra.mxu2 %v2156_v5 }
 0x92f   :  { %1188 = vmatpush.msrb.mxu3 %v2202_v40  ;;  %1294 = vmatpush.msra.mxu2 %v2163_v7 }
 0x931   :  { %v727_v33 = vpop.permute.xlu2 %726 }
 0x932   :  { %1674 = vmatmul.msk.f32.vlgmr.msrb.gmra.mxu1 %vm214_vm5, %v727_v33  ;;  %1678 = vmatmul.msk.f32.vlgmr.msrb.gmra.mxu0 %vm214_vm5, %v727_v33 }
 0x933   :  { %1205 = vmatpush.msrb.mxu0 %v2189_v36  ;;  %1092 = vmatpush.msrb.mxu1 %v2275_v62 }
 0x935   :  { %1206 = vmatpush.msrb.mxu0 %v2193_v37  ;;  %1093 = vmatpush.msrb.mxu1 %v2277_v63 }
 0x937   :  { %1207 = vmatpush.msrb.mxu0 %v2197_v39  ;;  %1094 = vmatpush.msrb.mxu1 %v2281_v1 }
 0x939   :  { %1208 = vmatpush.msrb.mxu0 %v2217_v46  ;;  %1095 = vmatpush.msrb.mxu1 %v2284_v3 }
 0x9ab   :  { %v946_v0 = vpop.f32.mrf.mxu2  ;;  %v840_v15 = vpop.f32.mrf.mxu3 }
 0x9ac   :  { %v969_v2 = vadd.f32 %v946_v0, %v2169_v9  ;;  %v949_v17 = vadd.f32 %v946_v0, %v2409_v13  ;;  %v841_v18 = vadd.f32 %v2259_v16, %v840_v15 }
 0x9ae   :  { %971 = vrot.lane.b32.xlu0 %v969_v2, %s2048_s5  ;;  %v1682_v19 = vmul.f32 -1.442695, %v949_v17 }
 0x9af   :  { %v747_v5 = vpop.f32.mrf.mxu1  ;;  %v860_v7 = vpop.f32.mrf.mxu0 }
 0x9b0   :  { %v748_v10 = vadd.f32 %v2317_v21, %v747_v5  ;;  %v883_v11 = vadd.f32 %v860_v7, %v2251_v56  ;;  %v863_v22 = vadd.f32 %v860_v7, %v841_v18  ;;  %1765 = vpow2.f32 %v1682_v19 }
 0x9b2   :  { %750 = vst [vmem:[#allocation14 + $0x4] sm:$0x3] %v748_v10  ;;  %885 = vrot.lane.b32.xlu1 %v883_v11, %s2048_s5  ;;  %v1679_v23 = vmul.f32 -1.442695, %v863_v22 }
 0x9b4   :  { %1767 = vpow2.f32 %v1679_v23 }
 0x9b6   :  { %v1766_v24 = vpop.eup %1765 }
 0x9b7   :  { %v953_v25 = vadd.f32 1.0, %v1766_v24 }
 0x9b9   :  { %1769 = vrcp.f32 %v953_v25  ;;  %v965_v43 = vand.u32 2147483648, %v953_v25  ;;  %vm959_vm0 = vweird.f32 %v953_v25  ;;  %v963_v44 = vand.u32 2147483647, %v953_v25 }
 0x9ba   :  { %v1768_v26 = vpop.eup %1767 }
 0x9bb   :  { %v867_v28 = vadd.f32 1.0, %v1768_v26  ;;  %v966_v48 = vor.u32 1.1754944e-38, %v965_v43  ;;  %vm964_vm3 = vcmp.eq.f32.partialorder %v963_v44, 8.507059e+37 }
 0x9bd   :  { %1771 = vrcp.f32 %v867_v28  ;;  %v879_v49 = vand.u32 2147483648, %v867_v28  ;;  %vm873_vm4 = vweird.f32 %v867_v28  ;;  %v877_v50 = vand.u32 2147483647, %v867_v28 }
 0x9bf   :  { %v1770_v29 = vpop.eup %1769  ;;  %v880_v53 = vor.u32 1.1754944e-38, %v879_v49  ;;  %vm878_vm7 = vcmp.eq.f32.partialorder %v877_v50, 8.507059e+37 }
 0x9c0   :  { %v955_v30 = vmul.f32 %v1770_v29, %v953_v25  ;;  %vm960_vm15 = vweird.f32 %v1770_v29  ;;  %v1821_v25 = vld [vmem:[#allocation7 + $0x8] sm:$0xff] }
 0x9c1   :  { %vm961_vm1 = vmor %vm959_vm0, %vm960_vm15 }
 0x9c2   :  { %v956_v20 = vsub.f32 1.0, %v955_v30 }
 0x9c3   :  { %v1772_v12 = vpop.eup %1771 }
 0x9c4   :  { %v869_v31 = vmul.f32 %v1772_v12, %v867_v28  ;;  %v957_v32 = vmul.f32 %v1770_v29, %v956_v20  ;;  %vm874_vm2 = vweird.f32 %v1772_v12 }
 0x9c5   :  { %vm875_vm6 = vmor %vm873_vm4, %vm874_vm2 }
 0x9c6   :  { %v870_v41 = vsub.f32 1.0, %v869_v31  ;;  %v958_v60 = vadd.f32 %v1770_v29, %v957_v32 }
 0x9c8   :  { %v871_v42 = vmul.f32 %v1772_v12, %v870_v41  ;;  %v962_v45 = vsel %vm961_vm1, %v1770_v29, %v958_v60 }
 0x9c9   :  { %v967_v52 = vsel %vm964_vm3, %v966_v48, %v962_v45 }
 0x9ca   :  { %v872_v47 = vadd.f32 %v1772_v12, %v871_v42  ;;  %v981_v5 = vsub.f32 1.0, %v967_v52  ;;  %v988_v10 = vmul.f32 %v967_v52, %v818_v14 }
 0x9cc   :  { %v876_v57 = vsel %vm875_vm6, %v1772_v12, %v872_v47 }
 0x9cd   :  { %v881_v61 = vsel %vm878_vm7, %v880_v53, %v876_v57 }
 0x9ce   :  { %v895_v17 = vsub.f32 1.0, %v881_v61  ;;  %v901_v22 = vmul.f32 %v881_v61, %v2378_v8  ;;  %v1820_v8 = vld [vmem:[#allocation7 + $0x10] sm:$0xff] }
 0xa20   :  { %v972_v51 = vpop.permute.xlu0 %971 }
 0xa21   :  { %v974_v54 = vmul.f32 %v972_v51, %v967_v52 }
 0xa23   :  { %976 = vrot.lane.b32.xlu2 %v974_v54, %s2048_s5 }
 0xa24   :  { %v886_v58 = vpop.permute.xlu1 %885 }
 0xa25   :  { %v888_v55 = vmul.f32 %v886_v58, %v881_v61 }
 0xa27   :  { %890 = vrot.lane.b32.xlu0 %v888_v55, %s2048_s5 }
 0xa7d   :  { %v977_v4 = vpop.permute.xlu2 %976 }
 0xa7e   :  { %v979_v6 = vadd.f32 %v977_v4, %v2409_v13 }
 0xa80   :  { %1773 = vtanh.f32 %v979_v6 }
 0xa86   :  { %v1774_v27 = vpop.eup %1773 }
 0xa87   :  { %983 = vrot.lane.b32.xlu1 %v1774_v27, %s2050_s3 }
 0xa99   :  { %v891_v33 = vpop.permute.xlu0 %890 }
 0xa9a   :  { %v893_v0 = vadd.f32 %v891_v33, %v841_v18 }
 0xa9c   :  { %1775 = vtanh.f32 %v893_v0 }
 0xaa2   :  { %v1776_v2 = vpop.eup %1775 }
 0xaa3   :  { %897 = vrot.lane.b32.xlu2 %v1776_v2, %s2050_s3 }
 0xaf9   :  { %v984_v7 = vpop.permute.xlu1 %983 }
 0xafa   :  { %v986_v11 = vmul.f32 %v984_v7, %v981_v5 }
 0xafc   :  { %v2420_v15 = vadd.f32 %v988_v10, %v986_v11 }
 0xafd   :  { %v898_v19 = vpop.permute.xlu2 %897 }
 0xafe   :  { %v900_v23 = vmul.f32 %v898_v19, %v895_v17  ;;  %991 = vrot.lane.b32.xlu0 %v2420_v15, %s2050_s3  ;;  %v1163_v45 = vrot.slane %v2420_v15, 6 }
 0xb00   :  { %v2425_v18 = vadd.f32 %v901_v22, %v900_v23 }
 0xb02   :  { %904 = vrot.lane.b32.xlu1 %v2425_v18, %s2050_s3 }
 0xb70   :  { %v992_v24 = vpop.permute.xlu0 %991 }
 0xb71   :  { %1683 = vmatmul.msk.f32.vlgmr.msra.gmra.mxu3 %vm214_vm5, %v992_v24  ;;  %1687 = vmatmul.msk.f32.vlgmr.msrb.gmra.mxu2 %vm214_vm5, %v992_v24 }
 0xb72   :  { %1363 = vmatpush.msra.mxu3 %v2185_v34  ;;  %1469 = vmatpush.msrb.mxu2 %v1819_v59  ;;  %v1822_v34 = vld [vmem:[#allocation7] sm:$0xff] }
 0xb74   :  { %v905_v14 = vpop.permute.xlu1 %904  ;;  %1364 = vmatpush.msra.mxu3 %v2187_v35  ;;  %1470 = vmatpush.msrb.mxu2 %v1820_v8 }
 0xb75   :  { %1680 = vmatmul.msk.f32.vlgmr.msra.gmra.mxu1 %vm214_vm5, %v905_v14  ;;  %1684 = vmatmul.msk.f32.vlgmr.msra.gmra.mxu0 %vm214_vm5, %v905_v14 }
 0xb76   :  { %1383 = vmatpush.msra.mxu0 %v2189_v36  ;;  %1270 = vmatpush.msra.mxu1 %v2275_v62 }
 0xb77   :  { %1365 = vmatpush.msra.mxu3 %v2195_v38  ;;  %1471 = vmatpush.msrb.mxu2 %v1821_v25 }
 0xb78   :  { %1384 = vmatpush.msra.mxu0 %v2193_v37  ;;  %1271 = vmatpush.msra.mxu1 %v2277_v63 }
 0xb79   :  { %1366 = vmatpush.msra.mxu3 %v2202_v40  ;;  %1472 = vmatpush.msrb.mxu2 %v1822_v34 }
 0xb7a   :  { %1385 = vmatpush.msra.mxu0 %v2197_v39  ;;  %1272 = vmatpush.msra.mxu1 %v2281_v1 }
 0xb7c   :  { %1386 = vmatpush.msra.mxu0 %v2217_v46  ;;  %1273 = vmatpush.msra.mxu1 %v2284_v3 }
 0xbf2   :  { %v925_v35 = vpop.f32.mrf.mxu1  ;;  %v1032_v36 = vpop.f32.mrf.mxu0 }
 0xbf3   :  { %v926_v38 = vadd.f32 %v2317_v21, %v925_v35  ;;  %v1055_v37 = vadd.f32 %v1032_v36, %v2251_v56 }
 0xbf4   :  { %v1118_v26 = vpop.f32.mrf.mxu2  ;;  %v1012_v50 = vpop.f32.mrf.mxu3 }
 0xbf5   :  { %928 = vst [vmem:[#allocation14 + $0x6] sm:$0x3] %v926_v38  ;;  %v1122_v28 = vrot.slane %v1118_v26, 6  ;;  %v1144_v40 = vadd.f32 %v1118_v26, %v2169_v9  ;;  %1057 = vrot.lane.b32.xlu0 %v1055_v37, %s2048_s5  ;;  %v1013_v51 = vadd.f32 %v2259_v16, %v1012_v50 }
 0xbf7   :  { %v1124_v39 = vadd.f32 %v1122_v28, %v2409_v13  ;;  %v1146_v29 = vrot.slane %v1144_v40, 6  ;;  %v1035_v52 = vadd.f32 %v1032_v36, %v1013_v51  ;;  %v1824_v40 = vld [vmem:[#allocation8 + $0x10] sm:$0xff] }
 0xbf9   :  { %v1688_v30 = vmul.f32 -1.442695, %v1124_v39  ;;  %1147 = vrot.lane.b32.xlu2 %v1146_v29, %s2048_s5  ;;  %v1685_v54 = vmul.f32 -1.442695, %v1035_v52  ;;  %v1825_v39 = vld [vmem:[#allocation8 + $0x8] sm:$0xff]  ;;  %v1826_v29 = vld [vmem:[#allocation8] sm:$0xff] }
 0xbfb   :  { %1777 = vpow2.f32 %v1688_v30 }
 0xc01   :  { %v1778_v46 = vpop.eup %1777 }
 0xc02   :  { %v1128_v12 = vadd.f32 1.0, %v1778_v46  ;;  %v1827_v46 = vld [vmem:[#allocation10 + $0x18] sm:$0xff] }
 0xc04   :  { %1779 = vrcp.f32 %v1128_v12  ;;  %v1140_v41 = vand.u32 2147483648, %v1128_v12  ;;  %v1138_v42 = vand.u32 2147483647, %v1128_v12  ;;  %vm1134_vm9 = vweird.f32 %v1128_v12 }
 0xc05   :  { %1781 = vpow2.f32 %v1685_v54 }
 0xc06   :  { %v1141_v44 = vor.u32 1.1754944e-38, %v1140_v41  ;;  %vm1139_vm11 = vcmp.eq.f32.partialorder %v1138_v42, 8.507059e+37 }
 0xc0a   :  { %v1780_v20 = vpop.eup %1779 }
 0xc0b   :  { %v1130_v31 = vmul.f32 %v1780_v20, %v1128_v12  ;;  %vm1135_vm8 = vweird.f32 %v1780_v20  ;;  %v1782_v57 = vpop.eup %1781  ;;  %v1828_v12 = vld [vmem:[#allocation10 + $0x10] sm:$0xff] }
 0xc0c   :  { %vm1136_vm10 = vmor %vm1134_vm9, %vm1135_vm8  ;;  %v1039_v53 = vadd.f32 1.0, %v1782_v57 }
 0xc0d   :  { %v1131_v32 = vsub.f32 1.0, %v1130_v31  ;;  %v1830_v31 = vld [vmem:[#allocation10] sm:$0xff] }
 0xc0e   :  { %1783 = vrcp.f32 %v1039_v53  ;;  %v1051_v0 = vand.u32 2147483648, %v1039_v53  ;;  %vm1045_vm13 = vweird.f32 %v1039_v53  ;;  %v1049_v2 = vand.u32 2147483647, %v1039_v53 }
 0xc0f   :  { %v1132_v60 = vmul.f32 %v1780_v20, %v1131_v32 }
 0xc10   :  { %v1052_v5 = vor.u32 1.1754944e-38, %v1051_v0  ;;  %vm1050_vm15 = vcmp.eq.f32.partialorder %v1049_v2, 8.507059e+37 }
 0xc11   :  { %v1133_v43 = vadd.f32 %v1780_v20, %v1132_v60 }
 0xc13   :  { %v1137_v47 = vsel %vm1136_vm10, %v1780_v20, %v1133_v43  ;;  %v1829_v20 = vld [vmem:[#allocation10 + $0x8] sm:$0xff] }
 0xc14   :  { %v1142_v48 = vsel %vm1139_vm11, %v1141_v44, %v1137_v47  ;;  %v1784_v58 = vpop.eup %1783 }
 0xc15   :  { %v1165_v49 = vmul.f32 %v1163_v45, %v1142_v48  ;;  %v1041_v4 = vmul.f32 %v1784_v58, %v1039_v53  ;;  %vm1046_vm12 = vweird.f32 %v1784_v58  ;;  %v1157_v35 = vsub.f32 1.0, %v1142_v48 }
 0xc16   :  { %vm1047_vm14 = vmor %vm1045_vm13, %vm1046_vm12 }
 0xc17   :  { %v1042_v6 = vsub.f32 1.0, %v1041_v4 }
 0xc19   :  { %v1043_v27 = vmul.f32 %v1784_v58, %v1042_v6 }
 0xc1b   :  { %v1044_v33 = vadd.f32 %v1784_v58, %v1043_v27 }
 0xc1d   :  { %v1048_v16 = vsel %vm1047_vm14, %v1784_v58, %v1044_v33 }
 0xc1e   :  { %v1053_v10 = vsel %vm1050_vm15, %v1052_v5, %v1048_v16 }
 0xc1f   :  { %v1067_v59 = vsub.f32 1.0, %v1053_v10  ;;  %v1073_v8 = vmul.f32 %v1053_v10, %v2425_v18  ;;  %v1823_v18 = vld [vmem:[#allocation8 + $0x18] sm:$0xff] }
 0xc53   :  { %v1148_v61 = vpop.permute.xlu2 %1147 }
 0xc54   :  { %v1150_v55 = vmul.f32 %v1148_v61, %v1142_v48 }
 0xc56   :  { %1152 = vrot.lane.b32.xlu1 %v1150_v55, %s2048_s5 }
 0xc67   :  { %v1058_v7 = vpop.permute.xlu0 %1057 }
 0xc68   :  { %v1060_v11 = vmul.f32 %v1058_v7, %v1053_v10 }
 0xc6a   :  { %1062 = vrot.lane.b32.xlu2 %v1060_v11, %s2048_s5 }
 0xcc4   :  { %v1063_v15 = vpop.permute.xlu2 %1062 }
 0xcc5   :  { %v1065_v17 = vadd.f32 %v1063_v15, %v1013_v51 }
 0xcc7   :  { %1785 = vtanh.f32 %v1065_v17 }
 0xcc8   :  { %v1153_v19 = vpop.permute.xlu1 %1152 }
 0xcc9   :  { %v1155_v22 = vadd.f32 %v1153_v19, %v2409_v13 }
 0xccb   :  { %1787 = vtanh.f32 %v1155_v22 }
 0xccd   :  { %v1786_v23 = vpop.eup %1785 }
 0xcce   :  { %1069 = vrot.lane.b32.xlu1 %v1786_v23, %s2050_s3 }
 0xcd1   :  { %v1788_v24 = vpop.eup %1787 }
 0xcd2   :  { %1159 = vrot.lane.b32.xlu0 %v1788_v24, %s2050_s3 }
 0xd40   :  { %v1070_v14 = vpop.permute.xlu1 %1069 }
 0xd41   :  { %v1072_v25 = vmul.f32 %v1070_v14, %v1067_v59 }
 0xd43   :  { %v2459_v34 = vadd.f32 %v1073_v8, %v1072_v25 }
 0xd44   :  { %v1160_v36 = vpop.permute.xlu0 %1159 }
 0xd45   :  { %v1162_v38 = vmul.f32 %v1160_v36, %v1157_v35  ;;  %1076 = vrot.lane.b32.xlu0 %v2459_v34, %s2050_s3 }
 0xd47   :  { %v2463_v37 = vadd.f32 %v1165_v49, %v1162_v38 }
 0xd49   :  { %v1168_v26 = vrot.slane %v2463_v37, 2 }
 0xd4b   :  { %1169 = vrot.lane.b32.xlu2 %v1168_v26, %s2050_s3 }
 0xda5   :  { %v1170_v28 = vpop.permute.xlu2 %1169 }
 0xda6   :  { %1689 = vmatmul.msk.f32.vlgmr.msrb.gmra.mxu3 %vm214_vm5, %v1170_v28  ;;  %1693 = vmatmul.msk.f32.vlgmr.msra.gmra.mxu2 %vm214_vm5, %v1170_v28 }
 0xda7   :  { %1541 = vmatpush.msrb.mxu3 %v1823_v18  ;;  %v1341_v18 = vrot.slane %v2463_v37, 6 }
 0xda9   :  { %1542 = vmatpush.msrb.mxu3 %v1824_v40 }
 0xdab   :  { %1543 = vmatpush.msrb.mxu3 %v1825_v39 }
 0xdad   :  { %1544 = vmatpush.msrb.mxu3 %v1826_v29 }
 0xdb7   :  { %v1077_v30 = vpop.permute.xlu0 %1076 }
 0xdb8   :  { %1686 = vmatmul.msk.f32.vlgmr.msrb.gmra.mxu1 %vm214_vm5, %v1077_v30  ;;  %1690 = vmatmul.msk.f32.vlgmr.msrb.gmra.mxu0 %vm214_vm5, %v1077_v30 }
 0xdb9   :  { %1561 = vmatpush.msrb.mxu0 %v1827_v46  ;;  %1448 = vmatpush.msrb.mxu1 %v2275_v62 }
 0xdbb   :  { %1562 = vmatpush.msrb.mxu0 %v1828_v12  ;;  %1449 = vmatpush.msrb.mxu1 %v2277_v63 }
 0xdbd   :  { %1563 = vmatpush.msrb.mxu0 %v1829_v20  ;;  %1450 = vmatpush.msrb.mxu1 %v2281_v1 }
 0xdbf   :  { %1564 = vmatpush.msrb.mxu0 %v1830_v31  ;;  %1451 = vmatpush.msrb.mxu1 %v2284_v3  ;;  %v2483_v3 = vld [vmem:[%s2545_s7] ss:$0 sm:$0xff]  ;;  %s2051_s7 = smov [#allocation14]  }
 0xdc0   :  { %s1639_s17 = sshll.u32 %s2051_s7, 4  ;;  %s1640_s17 = int_to_ptr.vmem [resolvable:$true] %s1639_s17 }
 0xe29   :  { %v1296_v32 = vpop.f32.mrf.mxu2  ;;  %v1190_v1 = vpop.f32.mrf.mxu3 }
 0xe2a   :  { %v1322_v41 = vadd.f32 %v1296_v32, %v2169_v9  ;;  %v1191_v44 = vadd.f32 %v2483_v3, %v1190_v1  ;;  %v1300_v48 = vrot.slane %v1296_v32, 4 }
 0xe2c   :  { %v1324_v60 = vrot.slane %v1322_v41, 4  ;;  %v1302_v50 = vadd.f32 %v1300_v48, %v2409_v13 }
 0xe2e   :  { %1325 = vrot.lane.b32.xlu1 %v1324_v60, %s2048_s5  ;;  %v1694_v52 = vmul.f32 -1.442695, %v1302_v50 }
 0xe35   :  { %v1097_v42 = vpop.f32.mrf.mxu1  ;;  %v1210_v62 = vpop.f32.mrf.mxu0 }
 0xe36   :  { %v1098_v43 = vadd.f32 %v2317_v21, %v1097_v42  ;;  %v1233_v63 = vadd.f32 %v1210_v62, %v2251_v56  ;;  %v1213_v45 = vadd.f32 %v1210_v62, %v1191_v44  ;;  %v1832_v42 = vld [vmem:[#allocation11 + $0x18] sm:$0xff]  ;;  %v1833_v62 = vld [vmem:[#allocation11 + $0x10] sm:$0xff] }
 0xe38   :  { %1100 = vst [vmem:[#allocation14 + $0x8] sm:$0x3] %v1098_v43  ;;  %1235 = vrot.lane.b32.xlu2 %v1233_v63, %s2048_s5  ;;  %v1691_v47 = vmul.f32 -1.442695, %v1213_v45  ;;  %v1834_v43 = vld [vmem:[#allocation11 + $0x8] sm:$0xff]  ;;  %v1835_v63 = vld [vmem:[#allocation11] sm:$0xff] }
 0xe3a   :  { %1789 = vpow2.f32 %v1691_v47 }
 0xe40   :  { %v1790_v49 = vpop.eup %1789 }
 0xe41   :  { %v1217_v51 = vadd.f32 1.0, %v1790_v49 }
 0xe43   :  { %1791 = vrcp.f32 %v1217_v51  ;;  %v1229_v27 = vand.u32 2147483648, %v1217_v51  ;;  %vm1223_vm1 = vweird.f32 %v1217_v51  ;;  %v1227_v33 = vand.u32 2147483647, %v1217_v51 }
 0xe44   :  { %1793 = vpow2.f32 %v1694_v52 }
 0xe45   :  { %v1230_v16 = vor.u32 1.1754944e-38, %v1229_v27  ;;  %vm1228_vm3 = vcmp.eq.f32.partialorder %v1227_v33, 8.507059e+37 }
 0xe49   :  { %v1792_v54 = vpop.eup %1791 }
 0xe4a   :  { %v1794_v57 = vpop.eup %1793  ;;  %v1219_v53 = vmul.f32 %v1792_v54, %v1217_v51  ;;  %vm1224_vm0 = vweird.f32 %v1792_v54 }
 0xe4b   :  { %v1306_v58 = vadd.f32 1.0, %v1794_v57  ;;  %vm1225_vm2 = vmor %vm1223_vm1, %vm1224_vm0 }
 0xe4c   :  { %v1220_v61 = vsub.f32 1.0, %v1219_v53 }
 0xe4d   :  { %1795 = vrcp.f32 %v1306_v58  ;;  %v1318_v19 = vand.u32 2147483648, %v1306_v58  ;;  %vm1312_vm6 = vweird.f32 %v1306_v58  ;;  %v1316_v22 = vand.u32 2147483647, %v1306_v58 }
 0xe4e   :  { %v1221_v55 = vmul.f32 %v1792_v54, %v1220_v61 }
 0xe4f   :  { %v1319_v24 = vor.u32 1.1754944e-38, %v1318_v19  ;;  %vm1317_vm8 = vcmp.eq.f32.partialorder %v1316_v22, 8.507059e+37 }
 0xe50   :  { %v1222_v6 = vadd.f32 %v1792_v54, %v1221_v55 }
 0xe52   :  { %v1226_v2 = vsel %vm1225_vm2, %v1792_v54, %v1222_v6 }
 0xe53   :  { %v1796_v4 = vpop.eup %1795  ;;  %v1231_v7 = vsel %vm1228_vm3, %v1230_v16, %v1226_v2 }
 0xe54   :  { %v1308_v0 = vmul.f32 %v1796_v4, %v1306_v58  ;;  %vm1313_vm4 = vweird.f32 %v1796_v4  ;;  %v1245_v20 = vsub.f32 1.0, %v1231_v7  ;;  %v1251_v32 = vmul.f32 %v1231_v7, %v2459_v34 }
 0xe55   :  { %vm1314_vm7 = vmor %vm1312_vm6, %vm1313_vm4 }
 0xe56   :  { %v1309_v5 = vsub.f32 1.0, %v1308_v0 }
 0xe58   :  { %v1310_v15 = vmul.f32 %v1796_v4, %v1309_v5 }
 0xe5a   :  { %v1311_v17 = vadd.f32 %v1796_v4, %v1310_v15 }
 0xe5c   :  { %v1315_v23 = vsel %vm1314_vm7, %v1796_v4, %v1311_v17 }
 0xe5d   :  { %v1320_v14 = vsel %vm1317_vm8, %v1319_v24, %v1315_v23 }
 0xe5e   :  { %v1335_v40 = vsub.f32 1.0, %v1320_v14  ;;  %v1343_v29 = vmul.f32 %v1341_v18, %v1320_v14 }
 0xe92   :  { %v1236_v10 = vpop.permute.xlu2 %1235 }
 0xe93   :  { %v1238_v11 = vmul.f32 %v1236_v10, %v1231_v7 }
 0xe95   :  { %1240 = vrot.lane.b32.xlu1 %v1238_v11, %s2048_s5 }
 0xea0   :  { %v1326_v59 = vpop.permute.xlu1 %1325 }
 0xea1   :  { %v1328_v8 = vmul.f32 %v1326_v59, %v1320_v14 }
 0xea3   :  { %1330 = vrot.lane.b32.xlu0 %v1328_v8, %s2048_s5 }
 0xf07   :  { %v1241_v25 = vpop.permute.xlu1 %1240 }
 0xf08   :  { %v1243_v35 = vadd.f32 %v1241_v25, %v1191_v44 }
 0xf0a   :  { %1797 = vtanh.f32 %v1243_v35 }
 0xf10   :  { %v1798_v36 = vpop.eup %1797 }
 0xf11   :  { %1247 = vrot.lane.b32.xlu0 %v1798_v36, %s2050_s3 }
 0xf15   :  { %v1331_v38 = vpop.permute.xlu0 %1330 }
 0xf16   :  { %v1333_v26 = vadd.f32 %v1331_v38, %v2409_v13 }
 0xf18   :  { %1799 = vtanh.f32 %v1333_v26 }
 0xf1e   :  { %v1800_v28 = vpop.eup %1799 }
 0xf1f   :  { %1337 = vrot.lane.b32.xlu2 %v1800_v28, %s2050_s3 }
 0xf79   :  { %v1338_v39 = vpop.permute.xlu2 %1337 }
 0xf7a   :  { %v1340_v30 = vmul.f32 %v1338_v39, %v1335_v40 }
 0xf7c   :  { %v2493_v46 = vadd.f32 %v1343_v29, %v1340_v30 }
 0xf7e   :  { %v1346_v12 = vrot.slane %v2493_v46, 4 }
 0xf80   :  { %1347 = vrot.lane.b32.xlu1 %v1346_v12, %s2050_s3 }
 0xf83   :  { %v1248_v31 = vpop.permute.xlu0 %1247 }
 0xf84   :  { %v1250_v41 = vmul.f32 %v1248_v31, %v1245_v20 }
 0xf86   :  { %v2498_v60 = vadd.f32 %v1251_v32, %v1250_v41 }
 0xf88   :  { %1254 = vrot.lane.b32.xlu2 %v2498_v60, %s2050_s3 }
 0xfe2   :  { %v1255_v37 = vpop.permute.xlu2 %1254 }
 0xfe3   :  { %1692 = vmatmul.msk.f32.vlgmr.msra.gmra.mxu1 %vm214_vm5, %v1255_v37  ;;  %1696 = vmatmul.msk.f32.vlgmr.msra.gmra.mxu0 %vm214_vm5, %v1255_v37  ;;  %v1519_v37 = vrot.slane %v2493_v46, 6 }
 0xfe4   :  { %1626 = vmatpush.msra.mxu1 %v1832_v42 }
 0xfe6   :  { %1627 = vmatpush.msra.mxu1 %v1833_v62 }
 0xfe8   :  { %1628 = vmatpush.msra.mxu1 %v1834_v43 }
 0xfea   :  { %1629 = vmatpush.msra.mxu1 %v1835_v63 }
 0xff2   :  { %v1348_v34 = vpop.permute.xlu1 %1347 }
 0xff3   :  { %1695 = vmatmul.msk.f32.vlgmr.msra.gmra.mxu3 %vm214_vm5, %v1348_v34  ;;  %1699 = vmatmul.msk.f32.vlgmr.msrb.gmra.mxu2 %vm214_vm5, %v1348_v34 }
0x1060   :  { %v1275_v1 = vpop.f32.mrf.mxu1  ;;  %v1388_v44 = vpop.f32.mrf.mxu0 }
0x1061   :  { %v1276_v45 = vadd.f32 %v2317_v21, %v1275_v1  ;;  %v1411_v47 = vadd.f32 %v1388_v44, %v2251_v56 }
0x1063   :  { %1278 = vst [vmem:[#allocation14 + $0xa] sm:$0x3] %v1276_v45  ;;  %1413 = vrot.lane.b32.xlu0 %v1411_v47, %s2048_s5  ;;  %v1836_v47 = vld [vmem:[#allocation13] ss:$0 sm:$0xff] }
0x1076   :  { %v1474_v48 = vpop.f32.mrf.mxu2  ;;  %v1368_v51 = vpop.f32.mrf.mxu3 }
0x1077   :  { %v1500_v49 = vadd.f32 %v1474_v48, %v2169_v9  ;;  %v1369_v52 = vadd.f32 %v2483_v3, %v1368_v51  ;;  %v1478_v21 = vrot.slane %v1474_v48, 2 }
0x1079   :  { %v1502_v50 = vrot.slane %v1500_v49, 2  ;;  %v1391_v54 = vadd.f32 %v1388_v44, %v1369_v52  ;;  %v1480_v61 = vadd.f32 %v1478_v21, %v2409_v13 }
0x107b   :  { %1503 = vrot.lane.b32.xlu1 %v1502_v50, %s2048_s5  ;;  %v1697_v57 = vmul.f32 -1.442695, %v1391_v54  ;;  %v1700_v4 = vmul.f32 -1.442695, %v1480_v61 }
0x107d   :  { %1801 = vpow2.f32 %v1697_v57 }
0x1083   :  { %v1802_v53 = vpop.eup %1801 }
0x1084   :  { %v1395_v58 = vadd.f32 1.0, %v1802_v53 }
0x1086   :  { %1803 = vrcp.f32 %v1395_v58  ;;  %v1407_v16 = vand.u32 2147483648, %v1395_v58  ;;  %vm1401_vm10 = vweird.f32 %v1395_v58  ;;  %v1405_v5 = vand.u32 2147483647, %v1395_v58 }
0x1087   :  { %1805 = vpow2.f32 %v1700_v4 }
0x1088   :  { %v1408_v10 = vor.u32 1.1754944e-38, %v1407_v16  ;;  %vm1406_vm12 = vcmp.eq.f32.partialorder %v1405_v5, 8.507059e+37 }
0x108c   :  { %v1804_v55 = vpop.eup %1803 }
0x108d   :  { %v1397_v6 = vmul.f32 %v1804_v55, %v1395_v58  ;;  %v1806_v27 = vpop.eup %1805  ;;  %vm1402_vm9 = vweird.f32 %v1804_v55 }
0x108e   :  { %v1484_v0 = vadd.f32 1.0, %v1806_v27  ;;  %vm1403_vm11 = vmor %vm1401_vm10, %vm1402_vm9 }
0x108f   :  { %v1398_v9 = vsub.f32 1.0, %v1397_v6 }
0x1090   :  { %1807 = vrcp.f32 %v1484_v0  ;;  %v1496_v14 = vand.u32 2147483648, %v1484_v0  ;;  %vm1490_vm14 = vweird.f32 %v1484_v0  ;;  %v1494_v8 = vand.u32 2147483647, %v1484_v0 }
0x1091   :  { %v1399_v33 = vmul.f32 %v1804_v55, %v1398_v9 }
0x1092   :  { %v1497_v35 = vor.u32 1.1754944e-38, %v1496_v14  ;;  %vm1495_vm0 = vcmp.eq.f32.partialorder %v1494_v8, 8.507059e+37 }
0x1093   :  { %v1400_v2 = vadd.f32 %v1804_v55, %v1399_v33 }
0x1095   :  { %v1404_v7 = vsel %vm1403_vm11, %v1804_v55, %v1400_v2 }
0x1096   :  { %v1409_v15 = vsel %vm1406_vm12, %v1408_v10, %v1404_v7  ;;  %v1808_v19 = vpop.eup %1807 }
0x1097   :  { %v1486_v22 = vmul.f32 %v1808_v19, %v1484_v0  ;;  %vm1491_vm13 = vweird.f32 %v1808_v19  ;;  %v1423_v12 = vsub.f32 1.0, %v1409_v15  ;;  %v1429_v31 = vmul.f32 %v1409_v15, %v2498_v60 }
0x1098   :  { %vm1492_vm15 = vmor %vm1490_vm14, %vm1491_vm13 }
0x1099   :  { %v1487_v23 = vsub.f32 1.0, %v1486_v22 }
0x109b   :  { %v1488_v24 = vmul.f32 %v1808_v19, %v1487_v23 }
0x109d   :  { %v1489_v59 = vadd.f32 %v1808_v19, %v1488_v24 }
0x109f   :  { %v1493_v25 = vsel %vm1492_vm15, %v1808_v19, %v1489_v59 }
0x10a0   :  { %v1498_v38 = vsel %vm1495_vm0, %v1497_v35, %v1493_v25 }
0x10a1   :  { %v1513_v42 = vsub.f32 1.0, %v1498_v38  ;;  %v1521_v43 = vmul.f32 %v1519_v37, %v1498_v38 }
0x10d5   :  { %v1414_v11 = vpop.permute.xlu0 %1413 }
0x10d6   :  { %v1416_v17 = vmul.f32 %v1414_v11, %v1409_v15 }
0x10d8   :  { %1418 = vrot.lane.b32.xlu2 %v1416_v17, %s2048_s5 }
0x10ed   :  { %v1504_v36 = vpop.permute.xlu1 %1503 }
0x10ee   :  { %v1506_v26 = vmul.f32 %v1504_v36, %v1498_v38 }
0x10f0   :  { %1508 = vrot.lane.b32.xlu0 %v1506_v26, %s2048_s5 }
0x1132   :  { %v1419_v28 = vpop.permute.xlu2 %1418 }
0x1133   :  { %v1421_v18 = vadd.f32 %v1419_v28, %v1369_v52 }
0x1135   :  { %1809 = vtanh.f32 %v1421_v18 }
0x113b   :  { %v1810_v40 = vpop.eup %1809 }
0x113c   :  { %1425 = vrot.lane.b32.xlu1 %v1810_v40, %s2050_s3 }
0x1162   :  { %v1509_v39 = vpop.permute.xlu0 %1508 }
0x1163   :  { %v1511_v29 = vadd.f32 %v1509_v39, %v2409_v13 }
0x1165   :  { %1811 = vtanh.f32 %v1511_v29 }
0x116b   :  { %v1812_v30 = vpop.eup %1811 }
0x116c   :  { %1515 = vrot.lane.b32.xlu2 %v1812_v30, %s2050_s3 }
0x11ae   :  { %v1426_v20 = vpop.permute.xlu1 %1425 }
0x11af   :  { %v1428_v32 = vmul.f32 %v1426_v20, %v1423_v12 }
0x11b1   :  { %v1430_v41 = vadd.f32 %v1429_v31, %v1428_v32 }
0x11b3   :  { %1432 = vrot.lane.b32.xlu0 %v1430_v41, %s2050_s3 }
0x11c6   :  { %v1516_v62 = vpop.permute.xlu2 %1515 }
0x11c7   :  { %v1518_v63 = vmul.f32 %v1516_v62, %v1513_v42 }
0x11c9   :  { %v1522_v34 = vadd.f32 %v1521_v43, %v1518_v63 }
0x11cb   :  { %v1524_v13 = vrot.slane %v1522_v34, 6 }
0x11cd   :  { %1525 = vrot.lane.b32.xlu1 %v1524_v13, %s2050_s3 }
0x1225   :  { %v1433_v1 = vpop.permute.xlu0 %1432 }
0x1226   :  { %1698 = vmatmul.msk.f32.vlgmr.msrb.gmra.mxu1 %vm214_vm5, %v1433_v1  ;;  %1702 = vmatmul.msk.f32.vlgmr.msrb.gmra.mxu0 %vm214_vm5, %v1433_v1 }
0x123f   :  { %v1526_v60 = vpop.permute.xlu1 %1525 }
0x1240   :  { %1701 = vmatmul.msk.f32.vlgmr.msrb.gmra.mxu3 %vm214_vm5, %v1526_v60 }
0x12a3   :  { %v1453_v44 = vpop.f32.mrf.mxu1  ;;  %v1566_v45 = vpop.f32.mrf.mxu0 }
0x12a4   :  { %v1454_v46 = vadd.f32 %v1836_v47, %v1453_v44  ;;  %v1589_v48 = vadd.f32 %v1566_v45, %v2251_v56 }
0x12a6   :  { %1456 = vst [vmem:[#allocation14 + $0xc] sm:$0x3] %v1454_v46  ;;  %1591 = vrot.lane.b32.xlu2 %v1589_v48, %s2048_s5 }
0x12c3   :  { %v1546_v49 = vpop.f32.mrf.mxu3 }
0x12c4   :  { %v1547_v50 = vadd.f32 %v2483_v3, %v1546_v49 }
0x12c6   :  { %v1569_v51 = vadd.f32 %v1566_v45, %v1547_v50 }
0x12c8   :  { %v1703_v52 = vmul.f32 -1.442695, %v1569_v51 }
0x12ca   :  { %1813 = vpow2.f32 %v1703_v52 }
0x12d0   :  { %v1814_v54 = vpop.eup %1813 }
0x12d1   :  { %v1573_v57 = vadd.f32 1.0, %v1814_v54 }
0x12d3   :  { %1815 = vrcp.f32 %v1573_v57  ;;  %v1585_v4 = vand.u32 2147483648, %v1573_v57  ;;  %vm1579_vm2 = vweird.f32 %v1573_v57  ;;  %v1583_v56 = vand.u32 2147483647, %v1573_v57 }
0x12d5   :  { %v1586_v9 = vor.u32 1.1754944e-38, %v1585_v4  ;;  %vm1584_vm4 = vcmp.eq.f32.partialorder %v1583_v56, 8.507059e+37 }
0x12d9   :  { %v1816_v53 = vpop.eup %1815 }
0x12da   :  { %v1575_v58 = vmul.f32 %v1816_v53, %v1573_v57  ;;  %vm1580_vm1 = vweird.f32 %v1816_v53 }
0x12db   :  { %vm1581_vm3 = vmor %vm1579_vm2, %vm1580_vm1 }
0x12dc   :  { %v1576_v21 = vsub.f32 1.0, %v1575_v58 }
0x12de   :  { %v1577_v61 = vmul.f32 %v1816_v53, %v1576_v21 }
0x12e0   :  { %v1578_v55 = vadd.f32 %v1816_v53, %v1577_v61 }
0x12e2   :  { %v1582_v6 = vsel %vm1581_vm3, %v1816_v53, %v1578_v55 }
0x12e3   :  { %v1587_v3 = vsel %vm1584_vm4, %v1586_v9, %v1582_v6 }
0x12e4   :  { %v1601_v5 = vsub.f32 1.0, %v1587_v3  ;;  %v1607_v10 = vmul.f32 %v1587_v3, %v1430_v41 }
0x1300   :  { %v1592_v27 = vpop.permute.xlu2 %1591 }
0x1301   :  { %v1594_v33 = vmul.f32 %v1592_v27, %v1587_v3 }
0x1303   :  { %1596 = vrot.lane.b32.xlu0 %v1594_v33, %s2048_s5 }
0x1375   :  { %v1597_v0 = vpop.permute.xlu0 %1596 }
0x1376   :  { %v1599_v2 = vadd.f32 %v1597_v0, %v1547_v50 }
0x1378   :  { %1817 = vtanh.f32 %v1599_v2 }
0x137e   :  { %v1818_v16 = vpop.eup %1817 }
0x137f   :  { %1603 = vrot.lane.b32.xlu1 %v1818_v16, %s2050_s3 }
0x13f1   :  { %v1604_v7 = vpop.permute.xlu1 %1603 }
0x13f2   :  { %v1606_v11 = vmul.f32 %v1604_v7, %v1601_v5 }
0x13f4   :  { %v1608_v15 = vadd.f32 %v1607_v10, %v1606_v11 }
0x13f6   :  { %1610 = vrot.lane.b32.xlu2 %v1608_v15, %s2050_s3 }
0x1450   :  { %v1611_v17 = vpop.permute.xlu2 %1610 }
0x1451   :  { %1704 = vmatmul.msk.f32.vlgmr.msra.gmra.mxu1 %vm214_vm5, %v1611_v17 }
0x14ce   :  { %v1631_v19 = vpop.f32.mrf.mxu1 }
0x14cf   :  { %v1632_v22 = vadd.f32 %v1836_v47, %v1631_v19 }
0x14d1   :  { %1634 = vst [vmem:[#allocation14 + $0xe] sm:$0x3] %v1632_v22 }
0x14d2   :  { %1647 = dma.vmem_to_hbm [thread:$0]  %s1640_s17, 256, %s1642_s0, [#allocation4], %s2040_s25, %s2040_s25, %s2041_s26  }
0x14d3   :  { %2037 = dma.done.wait [#allocation4], 256  }
0x14d4   :  { %2038 = vsyncadd [#allocation4], 4294967040 }
0x14d5   :  { %1652 = vsyncpa [#allocation3], 1 }
0x14d6   :  { %1653 = vsyncpa [#allocation6], 1 }
0x14d7   :  { %1654 = vsyncpa [#allocation9], 1 }
0x14d8   :  { %1655 = vsyncpa [#allocation12], 1 }
0x14d9   :  { %1656 = vsyncpa [#allocation4], 1 }

</bundles_post_ra>
